<compile_context>
chip_gen: v6e
topology: v6e:2x2x1
jax: 0.10.0
libtpu: 0.0.40
codegen_flags: <defaults>
</compile_context>

<pallas_src>
import functools

import numpy as np
import jax
import jax.numpy as jnp
from jax.experimental import pallas as pl
from jax.experimental.pallas import tpu as pltpu


def _median_rows(rows):
    """Median over a list of equally-shaped (Bt, Fw) tiles.

    Partial bubble (compare-exchange) that only pins enough of the largest
    elements to finalize the middle position(s).  Pure VPU min/max on
    sublane-dense tiles; matches jnp.median (average of middles for even n).
    """
    n = len(rows)
    if n == 1:
        return rows[0]
    if n == 2:
        return 0.5 * (rows[0] + rows[1])
    rows = list(rows)
    mid_lo = (n - 1) // 2
    mid_hi = n // 2
    npasses = n - mid_lo        # after these passes indices mid_lo..n-1 are final
    for p in range(npasses):
        for j in range(n - 1 - p):
            lo = jnp.minimum(rows[j], rows[j + 1])
            hi = jnp.maximum(rows[j], rows[j + 1])
            rows[j], rows[j + 1] = lo, hi
    if n % 2:
        return rows[mid_hi]
    return 0.5 * (rows[mid_lo] + rows[mid_hi])


def _psd_ratio_kernel(pred_ref, strain_ref, dft_ref, mask_ref, out_ref, *,
                      nseg, nstride, nperseg, fpad, batch_tile, asd,
                      inv_count, fstrip):
    dft = dft_ref[...]                       # (L, 2*Fpad) window+detrend folded
    mask = mask_ref[...]                     # (1, Fpad) float {0, 1}
    bt = batch_tile

    # ---- in-kernel Welch unfold via static (lane-aligned) slices ------------
    # rows: [pred seg 0..nseg-1, strain seg 0..nseg-1], each (bt, L)
    segs = []
    for s in range(nseg):
        st = s * nstride
        segs.append(pred_ref[:, st:st + nperseg].astype(dft.dtype))
    for s in range(nseg):
        st = s * nstride
        segs.append(strain_ref[:, st:st + nperseg].astype(dft.dtype))
    segs = jnp.concatenate(segs, axis=0)                  # (2*nseg*bt, L)

    # ---- single fused masked-band real-DFT matmul (detrend+window in D') ----
    proj = jnp.dot(segs, dft, preferred_element_type=jnp.float32)  # (M, 2*Fpad)

    # ---- strip-mined median / ratio epilogue (bounded live vregs) -----------
    partials = []
    for f0 in range(0, fpad, fstrip):
        fw = min(fstrip, fpad - f0)
        re = proj[:, f0:f0 + fw]
        im = proj[:, fpad + f0:fpad + f0 + fw]
        res_pow, tgt_pow = [], []
        for s in range(nseg):
            rp = re[s * bt:(s + 1) * bt]
            ip = im[s * bt:(s + 1) * bt]
            rs = re[(nseg + s) * bt:(nseg + s + 1) * bt]
            is_ = im[(nseg + s) * bt:(nseg + s + 1) * bt]
            # DFT linearity: cleaned = strain - pred, projected in freq domain.
            rc = rs - rp
            ic = is_ - ip
            res_pow.append(rc * rc + ic * ic)
            tgt_pow.append(rs * rs + is_ * is_)
        residual = _median_rows(res_pow)                  # (bt, fw)
        target = _median_rows(tgt_pow)                    # (bt, fw)
        m = mask[:, f0:f0 + fw]
        num = jnp.where(m > 0, residual, 0.0)             # NaN-safe at zero-pad bins
        den = jnp.where(m > 0, target, 1.0)
        ratio = num / den
        if asd:
            ratio = jnp.sqrt(ratio)
        partials.append(jnp.sum(ratio, axis=-1, keepdims=True))

    total = partials[0]
    for p in partials[1:]:
        total = total + p
    # NOTE: output block is (bt, 1) — a single tiny masked store per grid step.
    out_ref[...] = total * inv_count


class PsdRatioPallas:
    """JAX/Pallas port of the torch PsdRatio module."""

    def __init__(self, sample_rate, fftlength, freq_low, freq_high,
                 overlap=None, asd=False, batch_tile=32,
                 dft_dtype=jnp.bfloat16):
        self.sample_rate = float(sample_rate)
        self.asd = bool(asd)
        # batch tile rounded up to a sublane multiple (8)
        self.batch_tile = int(-(-max(1, int(batch_tile)) // 8) * 8)
        self.dft_dtype = dft_dtype

        self.nperseg = int(fftlength * sample_rate)
        if overlap is None:
            overlap = fftlength / 2
        self.nstride = self.nperseg - int(overlap * sample_rate)
        self.nfreq = int(fftlength * sample_rate / 2) + 1
        # nstride % 128 == 0 keeps the in-kernel Welch slices lane-aligned
        # (cheap sub-views). Misaligned strides still work (XLU realignment).
        self.stride_lane_aligned = (self.nstride % 128) == 0

        # frequency mask (identical construction to the torch buffer)
        mask = np.zeros((self.nfreq,), dtype=bool)
        for fl, fh in zip(freq_low, freq_high):
            low = int(fl * fftlength)
            high = int(fh * fftlength)
            mask[low:high + 1] = True
        self._mask_bool = mask
        masked_bins = np.nonzero(mask)[0]
        if masked_bins.size == 0:
            raise ValueError("frequency mask selects no bins")
        self.n_masked = int(masked_bins.size)
        self.inv_mask_count = 1.0 / self.n_masked
        # masked band padded out to a 128-lane multiple (zero DFT columns)
        self.fpad = max(128, -(-self.n_masked // 128) * 128)

        # periodic Hann window (torch.hann_window default) — kept for reference
        n = np.arange(self.nperseg, dtype=np.float64)
        win = 0.5 - 0.5 * np.cos(2.0 * np.pi * n / self.nperseg)
        self.window = jnp.asarray(win[None, :].astype(np.float32))

        # Real-DFT matrix restricted to the masked bins, cos || sin fused along
        # the lane axis, with the Hann window and the constant detrend folded
        # in:  D' = diag(w)·D − (1/L)·1_L·(wᵀ·D).
        k = masked_bins.astype(np.float64)
        theta = 2.0 * np.pi * np.outer(n, k) / self.nperseg   # (L, n_masked)
        cosm = np.cos(theta)
        sinm = -np.sin(theta)
        dw_cos = win[:, None] * cosm
        dw_sin = win[:, None] * sinm
        wc = win @ cosm
        ws = win @ sinm
        dp_cos = dw_cos - wc[None, :] / self.nperseg
        dp_sin = dw_sin - ws[None, :] / self.nperseg
        dft = np.zeros((self.nperseg, 2 * self.fpad), dtype=np.float64)
        dft[:, :self.n_masked] = dp_cos
        dft[:, self.fpad:self.fpad + self.n_masked] = dp_sin
        # bf16 operands double/triple MXU throughput on v5e/v6e/v7x and halve
        # the resident DFT VMEM footprint; accumulation stays f32 in-kernel.
        self.dft = jnp.asarray(dft.astype(np.float32)).astype(dft_dtype)

        # lane mask marking real (vs zero-pad) frequency columns
        mpad = np.zeros((1, self.fpad), dtype=np.float32)
        mpad[0, :self.n_masked] = 1.0
        self.lane_mask = jnp.asarray(mpad)

    # ---- VMEM budget, capped at the current generation's physical VMEM -----
    def _vmem_limit_bytes(self, T, nseg, bt):
        L, F = self.nperseg, self.fpad
        isz = int(jnp.dtype(self.dft_dtype).itemsize)
        m = 2 * nseg * bt
        dft = L * 2 * F * isz                     # single-buffered resident
        io = 2 * 2 * bt * T * 4                   # pred + strain, double-buffered
        segs = m * L * isz
        proj = m * 2 * F * 4
        epi = (2 * nseg + 8) * bt * min(F, 256) * 4
        est = dft + io + segs + proj + epi + (2 << 20)
        try:
            info = pltpu.get_tpu_info()
            phys = int(getattr(info, "vmem_capacity_bytes", 128 << 20))
        except Exception:
            phys = 128 << 20                      # v5e/v6e; v7x reports 64 MiB
        cap = (phys * 3) // 4                     # never exceed physical VMEM
        return int(min(cap, max(32 << 20, 2 * est)))

    # ---- pallas_call builder -------------------------------------------------
    def _build(self, T, nseg, bt, b_pad, single_buffer_consts):
        kernel = functools.partial(
            _psd_ratio_kernel, nseg=nseg, nstride=self.nstride,
            nperseg=self.nperseg, fpad=self.fpad, batch_tile=bt,
            asd=self.asd, inv_count=self.inv_mask_count,
            fstrip=min(256, self.fpad))

        # Constant-index-map operands never change block -> single buffer.
        ck = {"pipeline_mode": pl.Buffered(1)} if single_buffer_consts else {}
        in_specs = [
            pl.BlockSpec((bt, T), lambda i: (i, 0)),                  # pred
            pl.BlockSpec((bt, T), lambda i: (i, 0)),                  # strain
            pl.BlockSpec((self.nperseg, 2 * self.fpad),
                         lambda i: (0, 0), **ck),                     # DFT
            pl.BlockSpec((1, self.fpad), lambda i: (0, 0), **ck),     # mask
        ]
        return pl.pallas_call(
            kernel,
            out_shape=jax.ShapeDtypeStruct((b_pad, 1), jnp.float32),
            grid_spec=pltpu.PrefetchScalarGridSpec(
                num_scalar_prefetch=0,
                grid=(b_pad // bt,),
                in_specs=in_specs,
                out_specs=pl.BlockSpec((bt, 1), lambda i: (i, 0)),
            ),
            compiler_params=pltpu.CompilerParams(
                dimension_semantics=("parallel",),
                vmem_limit_bytes=self._vmem_limit_bytes(T, nseg, bt),
            ),
        )

    # ---- forward ------------------------------------------------------------
    def __call__(self, pred, strain):
        pred = jnp.asarray(pred, jnp.float32)
        strain = jnp.asarray(strain, jnp.float32)
        B, T = pred.shape
        nseg = (T - self.nperseg) // self.nstride + 1
        if nseg < 1:
            raise ValueError("input too short for one Welch segment")

        # Batch tile: sublane-aligned, no larger than the batch, and kept small
        # enough to give >= 2 grid steps when the batch allows (v7x megacore).
        b_min = -(-B // 8) * 8
        bt = max(8, (min(self.batch_tile, b_min) // 8) * 8)
        if B >= 16 and -(-B // bt) < 2:
            bt = max(8, ((b_min // 2) // 8) * 8)
        b_pad = -(-B // bt) * bt

        if b_pad != B:
            # edge-replicate so padded rows produce finite (discarded) values
            pred = jnp.pad(pred, ((0, b_pad - B), (0, 0)), mode="edge")
            strain = jnp.pad(strain, ((0, b_pad - B), (0, 0)), mode="edge")

        args = (pred, strain, self.dft, self.lane_mask)
        try:
            out = self._build(T, nseg, bt, b_pad, True)(*args)
        except Exception:
            # pipeline_mode=Buffered(1) unsupported on this jax version/backend
            out = self._build(T, nseg, bt, b_pad, False)(*args)
        return out[:B, 0]


# ---- pure-JAX reference (for a sanity check) --------------------------------
def psd_ratio_reference(mod, pred, strain):
    def welch(x):
        _, T = x.shape
        nseg = (T - mod.nperseg) // mod.nstride + 1
        idx = (np.arange(nseg)[:, None] * mod.nstride
               + np.arange(mod.nperseg)[None, :])
        segs = x[:, idx]                                      # (B, nseg, L)
        segs = segs - jnp.mean(segs, axis=-1, keepdims=True)
        segs = segs * mod.window                              # (1, L) broadcast
        fft = jnp.fft.rfft(segs, axis=-1)
        power = jnp.abs(fft) ** 2                             # scaling cancels
        return jnp.median(power, axis=1)                      # (B, nfreq)

    residual = welch(strain - pred)
    target = welch(strain)
    ratio = residual / target
    if mod.asd:
        ratio = jnp.sqrt(ratio)
    ratio = ratio[:, mod._mask_bool]
    return ratio.mean(axis=-1)


if __name__ == "__main__":
    sample_rate = 128.0
    fftlength = 2.0
    module = PsdRatioPallas(
        sample_rate=sample_rate,
        fftlength=fftlength,
        freq_low=[10.0],
        freq_high=[50.0],
        overlap=None,
        asd=False,
    )

    key = jax.random.PRNGKey(0)
    k1, k2 = jax.random.split(key)
    B = 2
    T = int(8 * sample_rate)     # 8 s -> 7 overlapping 2 s Welch segments
    strain = jax.random.normal(k1, (B, T), dtype=jnp.float32)
    pred = 0.5 * jax.random.normal(k2, (B, T), dtype=jnp.float32)

    loss = module(pred, strain)
    jax.block_until_ready(loss)

    ref = psd_ratio_reference(module, pred, strain)
    # bf16 DFT operands (f32 accumulation) vs f32 reference: ~<1% expected.
    if not np.allclose(np.asarray(loss), np.asarray(ref), rtol=3e-2, atol=1e-3):
        raise AssertionError(
            f"mismatch: pallas={np.asarray(loss)} ref={np.asarray(ref)}")

    print("KERNEL_OK")
</pallas_src>

<mosaic_0001>
module attributes {stable_mosaic.version = 11 : i64} {
  func.func @_psd_ratio_kernel(%arg0: i32, %arg1: memref<8x1024xf32, #tpu.memory_space<vmem>>, %arg2: memref<8x1024xf32, #tpu.memory_space<vmem>>, %arg3: memref<256x256xbf16, #tpu.memory_space<vmem>>, %arg4: memref<1x128xf32, #tpu.memory_space<vmem>>, %arg5: memref<8x1xf32, #tpu.memory_space<vmem>>) attributes {dimension_semantics = [#tpu.dimension_semantics<parallel>], iteration_bounds = array<i64: 1>, scalar_prefetch = 0 : i64, scratch_operands = 0 : i64, tpu.core_type = #tpu.core_type<tc>, window_params = [{transform_indices = @transform_0, window_bounds = array<i64: 8, 1024>}, {transform_indices = @transform_1, window_bounds = array<i64: 8, 1024>}, {pipeline_mode = #tpu.pipeline_mode<synchronous>, transform_indices = @transform_2, window_bounds = array<i64: 256, 256>}, {pipeline_mode = #tpu.pipeline_mode<synchronous>, transform_indices = @transform_3, window_bounds = array<i64: 1, 128>}, {transform_indices = @transform_4, window_bounds = array<i64: 8, 1>}]} {
    %c0 = arith.constant 0 : index
    %c0_0 = arith.constant 0 : index
    %0 = vector.load %arg3[%c0, %c0_0] : memref<256x256xbf16, #tpu.memory_space<vmem>>, vector<256x256xbf16>
    %c0_1 = arith.constant 0 : index
    %c0_2 = arith.constant 0 : index
    %1 = vector.load %arg4[%c0_1, %c0_2] : memref<1x128xf32, #tpu.memory_space<vmem>>, vector<1x128xf32>
    %c0_3 = arith.constant 0 : index
    %c0_4 = arith.constant 0 : index
    %2 = vector.load %arg1[%c0_3, %c0_4] : memref<8x1024xf32, #tpu.memory_space<vmem>>, vector<8x256xf32>
    %3 = arith.truncf %2 : vector<8x256xf32> to vector<8x256xbf16>
    %c0_5 = arith.constant 0 : index
    %c128 = arith.constant 128 : index
    %4 = vector.load %arg1[%c0_5, %c128] : memref<8x1024xf32, #tpu.memory_space<vmem>>, vector<8x256xf32>
    %5 = arith.truncf %4 : vector<8x256xf32> to vector<8x256xbf16>
    %c0_6 = arith.constant 0 : index
    %c256 = arith.constant 256 : index
    %6 = vector.load %arg1[%c0_6, %c256] : memref<8x1024xf32, #tpu.memory_space<vmem>>, vector<8x256xf32>
    %7 = arith.truncf %6 : vector<8x256xf32> to vector<8x256xbf16>
    %c0_7 = arith.constant 0 : index
    %c384 = arith.constant 384 : index
    %8 = vector.load %arg1[%c0_7, %c384] : memref<8x1024xf32, #tpu.memory_space<vmem>>, vector<8x256xf32>
    %9 = arith.truncf %8 : vector<8x256xf32> to vector<8x256xbf16>
    %c0_8 = arith.constant 0 : index
    %c512 = arith.constant 512 : index
    %10 = vector.load %arg1[%c0_8, %c512] : memref<8x1024xf32, #tpu.memory_space<vmem>>, vector<8x256xf32>
    %11 = arith.truncf %10 : vector<8x256xf32> to vector<8x256xbf16>
    %c0_9 = arith.constant 0 : index
    %c640 = arith.constant 640 : index
    %12 = vector.load %arg1[%c0_9, %c640] : memref<8x1024xf32, #tpu.memory_space<vmem>>, vector<8x256xf32>
    %13 = arith.truncf %12 : vector<8x256xf32> to vector<8x256xbf16>
    %c0_10 = arith.constant 0 : index
    %c768 = arith.constant 768 : index
    %14 = vector.load %arg1[%c0_10, %c768] : memref<8x1024xf32, #tpu.memory_space<vmem>>, vector<8x256xf32>
    %15 = arith.truncf %14 : vector<8x256xf32> to vector<8x256xbf16>
    %c0_11 = arith.constant 0 : index
    %c0_12 = arith.constant 0 : index
    %16 = vector.load %arg2[%c0_11, %c0_12] : memref<8x1024xf32, #tpu.memory_space<vmem>>, vector<8x256xf32>
    %17 = arith.truncf %16 : vector<8x256xf32> to vector<8x256xbf16>
    %c0_13 = arith.constant 0 : index
    %c128_14 = arith.constant 128 : index
    %18 = vector.load %arg2[%c0_13, %c128_14] : memref<8x1024xf32, #tpu.memory_space<vmem>>, vector<8x256xf32>
    %19 = arith.truncf %18 : vector<8x256xf32> to vector<8x256xbf16>
    %c0_15 = arith.constant 0 : index
    %c256_16 = arith.constant 256 : index
    %20 = vector.load %arg2[%c0_15, %c256_16] : memref<8x1024xf32, #tpu.memory_space<vmem>>, vector<8x256xf32>
    %21 = arith.truncf %20 : vector<8x256xf32> to vector<8x256xbf16>
    %c0_17 = arith.constant 0 : index
    %c384_18 = arith.constant 384 : index
    %22 = vector.load %arg2[%c0_17, %c384_18] : memref<8x1024xf32, #tpu.memory_space<vmem>>, vector<8x256xf32>
    %23 = arith.truncf %22 : vector<8x256xf32> to vector<8x256xbf16>
    %c0_19 = arith.constant 0 : index
    %c512_20 = arith.constant 512 : index
    %24 = vector.load %arg2[%c0_19, %c512_20] : memref<8x1024xf32, #tpu.memory_space<vmem>>, vector<8x256xf32>
    %25 = arith.truncf %24 : vector<8x256xf32> to vector<8x256xbf16>
    %c0_21 = arith.constant 0 : index
    %c640_22 = arith.constant 640 : index
    %26 = vector.load %arg2[%c0_21, %c640_22] : memref<8x1024xf32, #tpu.memory_space<vmem>>, vector<8x256xf32>
    %27 = arith.truncf %26 : vector<8x256xf32> to vector<8x256xbf16>
    %c0_23 = arith.constant 0 : index
    %c768_24 = arith.constant 768 : index
    %28 = vector.load %arg2[%c0_23, %c768_24] : memref<8x1024xf32, #tpu.memory_space<vmem>>, vector<8x256xf32>
    %29 = arith.truncf %28 : vector<8x256xf32> to vector<8x256xbf16>
    %30 = tpu.concatenate %3, %5, %7, %9, %11, %13, %15, %17, %19, %21, %23, %25, %27, %29 in 0 : vector<8x256xbf16>, vector<8x256xbf16>, vector<8x256xbf16>, vector<8x256xbf16>, vector<8x256xbf16>, vector<8x256xbf16>, vector<8x256xbf16>, vector<8x256xbf16>, vector<8x256xbf16>, vector<8x256xbf16>, vector<8x256xbf16>, vector<8x256xbf16>, vector<8x256xbf16>, vector<8x256xbf16> -> vector<112x256xbf16>
    %cst = arith.constant dense<0.000000e+00> : vector<112x256xf32>
    %31 = tpu.matmul %30, %0, %cst {dimension_numbers = #tpu.dot_dimension_numbers<[1], [0], [0], [1], [0, 0, 1, 1], [], []>} : vector<112x256xbf16>, vector<256x256xbf16>, vector<112x256xf32> -> vector<112x256xf32>
    %32 = vector.extract_strided_slice %31 {offsets = [0, 0], sizes = [112, 128], strides = [1, 1]} : vector<112x256xf32> to vector<112x128xf32>
    %33 = vector.extract_strided_slice %31 {offsets = [0, 128], sizes = [112, 128], strides = [1, 1]} : vector<112x256xf32> to vector<112x128xf32>
    %34 = vector.extract_strided_slice %32 {offsets = [0, 0], sizes = [8, 128], strides = [1, 1]} : vector<112x128xf32> to vector<8x128xf32>
    %35 = vector.extract_strided_slice %33 {offsets = [0, 0], sizes = [8, 128], strides = [1, 1]} : vector<112x128xf32> to vector<8x128xf32>
    %36 = vector.extract_strided_slice %32 {offsets = [56, 0], sizes = [8, 128], strides = [1, 1]} : vector<112x128xf32> to vector<8x128xf32>
    %37 = vector.extract_strided_slice %33 {offsets = [56, 0], sizes = [8, 128], strides = [1, 1]} : vector<112x128xf32> to vector<8x128xf32>
    %38 = arith.subf %36, %34 : vector<8x128xf32>
    %39 = arith.subf %37, %35 : vector<8x128xf32>
    %40 = arith.mulf %38, %38 : vector<8x128xf32>
    %41 = arith.mulf %39, %39 : vector<8x128xf32>
    %42 = arith.addf %40, %41 : vector<8x128xf32>
    %43 = arith.mulf %36, %36 : vector<8x128xf32>
    %44 = arith.mulf %37, %37 : vector<8x128xf32>
    %45 = arith.addf %43, %44 : vector<8x128xf32>
    %46 = vector.extract_strided_slice %32 {offsets = [8, 0], sizes = [8, 128], strides = [1, 1]} : vector<112x128xf32> to vector<8x128xf32>
    %47 = vector.extract_strided_slice %33 {offsets = [8, 0], sizes = [8, 128], strides = [1, 1]} : vector<112x128xf32> to vector<8x128xf32>
    %48 = vector.extract_strided_slice %32 {offsets = [64, 0], sizes = [8, 128], strides = [1, 1]} : vector<112x128xf32> to vector<8x128xf32>
    %49 = vector.extract_strided_slice %33 {offsets = [64, 0], sizes = [8, 128], strides = [1, 1]} : vector<112x128xf32> to vector<8x128xf32>
    %50 = arith.subf %48, %46 : vector<8x128xf32>
    %51 = arith.subf %49, %47 : vector<8x128xf32>
    %52 = arith.mulf %50, %50 : vector<8x128xf32>
    %53 = arith.mulf %51, %51 : vector<8x128xf32>
    %54 = arith.addf %52, %53 : vector<8x128xf32>
    %55 = arith.mulf %48, %48 : vector<8x128xf32>
    %56 = arith.mulf %49, %49 : vector<8x128xf32>
    %57 = arith.addf %55, %56 : vector<8x128xf32>
    %58 = vector.extract_strided_slice %32 {offsets = [16, 0], sizes = [8, 128], strides = [1, 1]} : vector<112x128xf32> to vector<8x128xf32>
    %59 = vector.extract_strided_slice %33 {offsets = [16, 0], sizes = [8, 128], strides = [1, 1]} : vector<112x128xf32> to vector<8x128xf32>
    %60 = vector.extract_strided_slice %32 {offsets = [72, 0], sizes = [8, 128], strides = [1, 1]} : vector<112x128xf32> to vector<8x128xf32>
    %61 = vector.extract_strided_slice %33 {offsets = [72, 0], sizes = [8, 128], strides = [1, 1]} : vector<112x128xf32> to vector<8x128xf32>
    %62 = arith.subf %60, %58 : vector<8x128xf32>
    %63 = arith.subf %61, %59 : vector<8x128xf32>
    %64 = arith.mulf %62, %62 : vector<8x128xf32>
    %65 = arith.mulf %63, %63 : vector<8x128xf32>
    %66 = arith.addf %64, %65 : vector<8x128xf32>
    %67 = arith.mulf %60, %60 : vector<8x128xf32>
    %68 = arith.mulf %61, %61 : vector<8x128xf32>
    %69 = arith.addf %67, %68 : vector<8x128xf32>
    %70 = vector.extract_strided_slice %32 {offsets = [24, 0], sizes = [8, 128], strides = [1, 1]} : vector<112x128xf32> to vector<8x128xf32>
    %71 = vector.extract_strided_slice %33 {offsets = [24, 0], sizes = [8, 128], strides = [1, 1]} : vector<112x128xf32> to vector<8x128xf32>
    %72 = vector.extract_strided_slice %32 {offsets = [80, 0], sizes = [8, 128], strides = [1, 1]} : vector<112x128xf32> to vector<8x128xf32>
    %73 = vector.extract_strided_slice %33 {offsets = [80, 0], sizes = [8, 128], strides = [1, 1]} : vector<112x128xf32> to vector<8x128xf32>
    %74 = arith.subf %72, %70 : vector<8x128xf32>
    %75 = arith.subf %73, %71 : vector<8x128xf32>
    %76 = arith.mulf %74, %74 : vector<8x128xf32>
    %77 = arith.mulf %75, %75 : vector<8x128xf32>
    %78 = arith.addf %76, %77 : vector<8x128xf32>
    %79 = arith.mulf %72, %72 : vector<8x128xf32>
    %80 = arith.mulf %73, %73 : vector<8x128xf32>
    %81 = arith.addf %79, %80 : vector<8x128xf32>
    %82 = vector.extract_strided_slice %32 {offsets = [32, 0], sizes = [8, 128], strides = [1, 1]} : vector<112x128xf32> to vector<8x128xf32>
    %83 = vector.extract_strided_slice %33 {offsets = [32, 0], sizes = [8, 128], strides = [1, 1]} : vector<112x128xf32> to vector<8x128xf32>
    %84 = vector.extract_strided_slice %32 {offsets = [88, 0], sizes = [8, 128], strides = [1, 1]} : vector<112x128xf32> to vector<8x128xf32>
    %85 = vector.extract_strided_slice %33 {offsets = [88, 0], sizes = [8, 128], strides = [1, 1]} : vector<112x128xf32> to vector<8x128xf32>
    %86 = arith.subf %84, %82 : vector<8x128xf32>
    %87 = arith.subf %85, %83 : vector<8x128xf32>
    %88 = arith.mulf %86, %86 : vector<8x128xf32>
    %89 = arith.mulf %87, %87 : vector<8x128xf32>
    %90 = arith.addf %88, %89 : vector<8x128xf32>
    %91 = arith.mulf %84, %84 : vector<8x128xf32>
    %92 = arith.mulf %85, %85 : vector<8x128xf32>
    %93 = arith.addf %91, %92 : vector<8x128xf32>
    %94 = vector.extract_strided_slice %32 {offsets = [40, 0], sizes = [8, 128], strides = [1, 1]} : vector<112x128xf32> to vector<8x128xf32>
    %95 = vector.extract_strided_slice %33 {offsets = [40, 0], sizes = [8, 128], strides = [1, 1]} : vector<112x128xf32> to vector<8x128xf32>
    %96 = vector.extract_strided_slice %32 {offsets = [96, 0], sizes = [8, 128], strides = [1, 1]} : vector<112x128xf32> to vector<8x128xf32>
    %97 = vector.extract_strided_slice %33 {offsets = [96, 0], sizes = [8, 128], strides = [1, 1]} : vector<112x128xf32> to vector<8x128xf32>
    %98 = arith.subf %96, %94 : vector<8x128xf32>
    %99 = arith.subf %97, %95 : vector<8x128xf32>
    %100 = arith.mulf %98, %98 : vector<8x128xf32>
    %101 = arith.mulf %99, %99 : vector<8x128xf32>
    %102 = arith.addf %100, %101 : vector<8x128xf32>
    %103 = arith.mulf %96, %96 : vector<8x128xf32>
    %104 = arith.mulf %97, %97 : vector<8x128xf32>
    %105 = arith.addf %103, %104 : vector<8x128xf32>
    %106 = vector.extract_strided_slice %32 {offsets = [48, 0], sizes = [8, 128], strides = [1, 1]} : vector<112x128xf32> to vector<8x128xf32>
    %107 = vector.extract_strided_slice %33 {offsets = [48, 0], sizes = [8, 128], strides = [1, 1]} : vector<112x128xf32> to vector<8x128xf32>
    %108 = vector.extract_strided_slice %32 {offsets = [104, 0], sizes = [8, 128], strides = [1, 1]} : vector<112x128xf32> to vector<8x128xf32>
    %109 = vector.extract_strided_slice %33 {offsets = [104, 0], sizes = [8, 128], strides = [1, 1]} : vector<112x128xf32> to vector<8x128xf32>
    %110 = arith.subf %108, %106 : vector<8x128xf32>
    %111 = arith.subf %109, %107 : vector<8x128xf32>
    %112 = arith.mulf %110, %110 : vector<8x128xf32>
    %113 = arith.mulf %111, %111 : vector<8x128xf32>
    %114 = arith.addf %112, %113 : vector<8x128xf32>
    %115 = arith.mulf %108, %108 : vector<8x128xf32>
    %116 = arith.mulf %109, %109 : vector<8x128xf32>
    %117 = arith.addf %115, %116 : vector<8x128xf32>
    %118 = arith.minimumf %42, %54 : vector<8x128xf32>
    %119 = arith.maximumf %42, %54 : vector<8x128xf32>
    %120 = arith.minimumf %119, %66 : vector<8x128xf32>
    %121 = arith.maximumf %119, %66 : vector<8x128xf32>
    %122 = arith.minimumf %121, %78 : vector<8x128xf32>
    %123 = arith.maximumf %121, %78 : vector<8x128xf32>
    %124 = arith.minimumf %123, %90 : vector<8x128xf32>
    %125 = arith.maximumf %123, %90 : vector<8x128xf32>
    %126 = arith.minimumf %125, %102 : vector<8x128xf32>
    %127 = arith.maximumf %125, %102 : vector<8x128xf32>
    %128 = arith.minimumf %127, %114 : vector<8x128xf32>
    %129 = arith.minimumf %118, %120 : vector<8x128xf32>
    %130 = arith.maximumf %118, %120 : vector<8x128xf32>
    %131 = arith.minimumf %130, %122 : vector<8x128xf32>
    %132 = arith.maximumf %130, %122 : vector<8x128xf32>
    %133 = arith.minimumf %132, %124 : vector<8x128xf32>
    %134 = arith.maximumf %132, %124 : vector<8x128xf32>
    %135 = arith.minimumf %134, %126 : vector<8x128xf32>
    %136 = arith.maximumf %134, %126 : vector<8x128xf32>
    %137 = arith.minimumf %136, %128 : vector<8x128xf32>
    %138 = arith.minimumf %129, %131 : vector<8x128xf32>
    %139 = arith.maximumf %129, %131 : vector<8x128xf32>
    %140 = arith.minimumf %139, %133 : vector<8x128xf32>
    %141 = arith.maximumf %139, %133 : vector<8x128xf32>
    %142 = arith.minimumf %141, %135 : vector<8x128xf32>
    %143 = arith.maximumf %141, %135 : vector<8x128xf32>
    %144 = arith.minimumf %143, %137 : vector<8x128xf32>
    %145 = arith.maximumf %138, %140 : vector<8x128xf32>
    %146 = arith.maximumf %145, %142 : vector<8x128xf32>
    %147 = arith.maximumf %146, %144 : vector<8x128xf32>
    %148 = arith.minimumf %45, %57 : vector<8x128xf32>
    %149 = arith.maximumf %45, %57 : vector<8x128xf32>
    %150 = arith.minimumf %149, %69 : vector<8x128xf32>
    %151 = arith.maximumf %149, %69 : vector<8x128xf32>
    %152 = arith.minimumf %151, %81 : vector<8x128xf32>
    %153 = arith.maximumf %151, %81 : vector<8x128xf32>
    %154 = arith.minimumf %153, %93 : vector<8x128xf32>
    %155 = arith.maximumf %153, %93 : vector<8x128xf32>
    %156 = arith.minimumf %155, %105 : vector<8x128xf32>
    %157 = arith.maximumf %155, %105 : vector<8x128xf32>
    %158 = arith.minimumf %157, %117 : vector<8x128xf32>
    %159 = arith.minimumf %148, %150 : vector<8x128xf32>
    %160 = arith.maximumf %148, %150 : vector<8x128xf32>
    %161 = arith.minimumf %160, %152 : vector<8x128xf32>
    %162 = arith.maximumf %160, %152 : vector<8x128xf32>
    %163 = arith.minimumf %162, %154 : vector<8x128xf32>
    %164 = arith.maximumf %162, %154 : vector<8x128xf32>
    %165 = arith.minimumf %164, %156 : vector<8x128xf32>
    %166 = arith.maximumf %164, %156 : vector<8x128xf32>
    %167 = arith.minimumf %166, %158 : vector<8x128xf32>
    %168 = arith.minimumf %159, %161 : vector<8x128xf32>
    %169 = arith.maximumf %159, %161 : vector<8x128xf32>
    %170 = arith.minimumf %169, %163 : vector<8x128xf32>
    %171 = arith.maximumf %169, %163 : vector<8x128xf32>
    %172 = arith.minimumf %171, %165 : vector<8x128xf32>
    %173 = arith.maximumf %171, %165 : vector<8x128xf32>
    %174 = arith.minimumf %173, %167 : vector<8x128xf32>
    %175 = arith.maximumf %168, %170 : vector<8x128xf32>
    %176 = arith.maximumf %175, %172 : vector<8x128xf32>
    %177 = arith.maximumf %176, %174 : vector<8x128xf32>
    %cst_25 = arith.constant 0.000000e+00 : f32
    %178 = vector.broadcast %cst_25 : f32 to vector<1x128xf32>
    %179 = arith.cmpf ogt, %1, %178 : vector<1x128xf32>
    %cst_26 = arith.constant 0.000000e+00 : f32
    %180 = vector.shape_cast %179 : vector<1x128xi1> to vector<1x128xi1>
    %181 = vector.broadcast %180 : vector<1x128xi1> to vector<8x128xi1>
    %182 = vector.broadcast %cst_26 : f32 to vector<8x128xf32>
    %183 = arith.select %181, %147, %182 : vector<8x128xi1>, vector<8x128xf32>
    %cst_27 = arith.constant 0.000000e+00 : f32
    %184 = vector.broadcast %cst_27 : f32 to vector<1x128xf32>
    %185 = arith.cmpf ogt, %1, %184 : vector<1x128xf32>
    %cst_28 = arith.constant 1.000000e+00 : f32
    %186 = vector.shape_cast %185 : vector<1x128xi1> to vector<1x128xi1>
    %187 = vector.broadcast %186 : vector<1x128xi1> to vector<8x128xi1>
    %188 = vector.broadcast %cst_28 : f32 to vector<8x128xf32>
    %189 = arith.select %187, %177, %188 : vector<8x128xi1>, vector<8x128xf32>
    %190 = arith.divf %183, %189 : vector<8x128xf32>
    %cst_29 = arith.constant dense<0.000000e+00> : vector<8xf32>
    %191 = vector.multi_reduction <add>, %190, %cst_29 [1] : vector<8x128xf32> to vector<8xf32>
    %192 = vector.shape_cast %191 : vector<8xf32> to vector<8x1xf32>
    %cst_30 = arith.constant 0.0123456791 : f32
    %193 = vector.broadcast %cst_30 : f32 to vector<8x1xf32>
    %194 = arith.mulf %192, %193 : vector<8x1xf32>
    %c0_31 = arith.constant 0 : index
    %c0_32 = arith.constant 0 : index
    %195 = vector.load %arg5[%c0_31, %c0_32] : memref<8x1xf32, #tpu.memory_space<vmem>>, vector<8x1xf32>
    tpu.vector_store %arg5[%c0_31, %c0_32], %194 {strides = array<i32>} : memref<8x1xf32, #tpu.memory_space<vmem>>, vector<8x1xf32>,
    return
  }
  func.func @transform_0(%arg0: i32) -> (i32, i32) {
    %c0_i32 = arith.constant 0 : i32
    %c0_i32_0 = arith.constant 0 : i32
    return %arg0, %c0_i32 : i32, i32
  }
  func.func @transform_1(%arg0: i32) -> (i32, i32) {
    %c0_i32 = arith.constant 0 : i32
    %c0_i32_0 = arith.constant 0 : i32
    return %arg0, %c0_i32 : i32, i32
  }
  func.func @transform_2(%arg0: i32) -> (i32, i32) {
    %c0_i32 = arith.constant 0 : i32
    %c0_i32_0 = arith.constant 0 : i32
    %c0_i32_1 = arith.constant 0 : i32
    return %c0_i32, %c0_i32_0 : i32, i32
  }
  func.func @transform_3(%arg0: i32) -> (i32, i32) {
    %c0_i32 = arith.constant 0 : i32
    %c0_i32_0 = arith.constant 0 : i32
    %c0_i32_1 = arith.constant 0 : i32
    return %c0_i32, %c0_i32_0 : i32, i32
  }
  func.func @transform_4(%arg0: i32) -> (i32, i32) {
    %c0_i32 = arith.constant 0 : i32
    %c0_i32_0 = arith.constant 0 : i32
    return %arg0, %c0_i32 : i32, i32
  }
}

module attributes {stable_mosaic.version = 11 : i64} {
  func.func @_psd_ratio_kernel(%arg0: i32, %arg1: memref<8x1024xf32, #tpu.memory_space<vmem>>, %arg2: memref<8x1024xf32, #tpu.memory_space<vmem>>, %arg3: memref<256x256xbf16, #tpu.memory_space<vmem>>, %arg4: memref<1x128xf32, #tpu.memory_space<vmem>>, %arg5: memref<8x1xf32, #tpu.memory_space<vmem>>) attributes {dimension_semantics = [#tpu.dimension_semantics<parallel>], iteration_bounds = array<i64: 1>, scalar_prefetch = 0 : i64, scratch_operands = 0 : i64, tpu.core_type = #tpu.core_type<tc>, window_params = [{transform_indices = @transform_0, window_bounds = array<i64: 8, 1024>}, {transform_indices = @transform_1, window_bounds = array<i64: 8, 1024>}, {pipeline_mode = #tpu.pipeline_mode<synchronous>, transform_indices = @transform_2, window_bounds = array<i64: 256, 256>}, {pipeline_mode = #tpu.pipeline_mode<synchronous>, transform_indices = @transform_3, window_bounds = array<i64: 1, 128>}, {transform_indices = @transform_4, window_bounds = array<i64: 8, 1>}]} {
    %c0 = arith.constant 0 : index
    %c0_0 = arith.constant 0 : index
    %0 = vector.load %arg3[%c0, %c0_0] : memref<256x256xbf16, #tpu.memory_space<vmem>>, vector<256x256xbf16>
    %c0_1 = arith.constant 0 : index
    %c0_2 = arith.constant 0 : index
    %1 = vector.load %arg4[%c0_1, %c0_2] : memref<1x128xf32, #tpu.memory_space<vmem>>, vector<1x128xf32>
    %c0_3 = arith.constant 0 : index
    %c0_4 = arith.constant 0 : index
    %2 = vector.load %arg1[%c0_3, %c0_4] : memref<8x1024xf32, #tpu.memory_space<vmem>>, vector<8x256xf32>
    %3 = arith.truncf %2 : vector<8x256xf32> to vector<8x256xbf16>
    %c0_5 = arith.constant 0 : index
    %c128 = arith.constant 128 : index
    %4 = vector.load %arg1[%c0_5, %c128] : memref<8x1024xf32, #tpu.memory_space<vmem>>, vector<8x256xf32>
    %5 = arith.truncf %4 : vector<8x256xf32> to vector<8x256xbf16>
    %c0_6 = arith.constant 0 : index
    %c256 = arith.constant 256 : index
    %6 = vector.load %arg1[%c0_6, %c256] : memref<8x1024xf32, #tpu.memory_space<vmem>>, vector<8x256xf32>
    %7 = arith.truncf %6 : vector<8x256xf32> to vector<8x256xbf16>
    %c0_7 = arith.constant 0 : index
    %c384 = arith.constant 384 : index
    %8 = vector.load %arg1[%c0_7, %c384] : memref<8x1024xf32, #tpu.memory_space<vmem>>, vector<8x256xf32>
    %9 = arith.truncf %8 : vector<8x256xf32> to vector<8x256xbf16>
    %c0_8 = arith.constant 0 : index
    %c512 = arith.constant 512 : index
    %10 = vector.load %arg1[%c0_8, %c512] : memref<8x1024xf32, #tpu.memory_space<vmem>>, vector<8x256xf32>
    %11 = arith.truncf %10 : vector<8x256xf32> to vector<8x256xbf16>
    %c0_9 = arith.constant 0 : index
    %c640 = arith.constant 640 : index
    %12 = vector.load %arg1[%c0_9, %c640] : memref<8x1024xf32, #tpu.memory_space<vmem>>, vector<8x256xf32>
    %13 = arith.truncf %12 : vector<8x256xf32> to vector<8x256xbf16>
    %c0_10 = arith.constant 0 : index
    %c768 = arith.constant 768 : index
    %14 = vector.load %arg1[%c0_10, %c768] : memref<8x1024xf32, #tpu.memory_space<vmem>>, vector<8x256xf32>
    %15 = arith.truncf %14 : vector<8x256xf32> to vector<8x256xbf16>
    %c0_11 = arith.constant 0 : index
    %c0_12 = arith.constant 0 : index
    %16 = vector.load %arg2[%c0_11, %c0_12] : memref<8x1024xf32, #tpu.memory_space<vmem>>, vector<8x256xf32>
    %17 = arith.truncf %16 : vector<8x256xf32> to vector<8x256xbf16>
    %c0_13 = arith.constant 0 : index
    %c128_14 = arith.constant 128 : index
    %18 = vector.load %arg2[%c0_13, %c128_14] : memref<8x1024xf32, #tpu.memory_space<vmem>>, vector<8x256xf32>
    %19 = arith.truncf %18 : vector<8x256xf32> to vector<8x256xbf16>
    %c0_15 = arith.constant 0 : index
    %c256_16 = arith.constant 256 : index
    %20 = vector.load %arg2[%c0_15, %c256_16] : memref<8x1024xf32, #tpu.memory_space<vmem>>, vector<8x256xf32>
    %21 = arith.truncf %20 : vector<8x256xf32> to vector<8x256xbf16>
    %c0_17 = arith.constant 0 : index
    %c384_18 = arith.constant 384 : index
    %22 = vector.load %arg2[%c0_17, %c384_18] : memref<8x1024xf32, #tpu.memory_space<vmem>>, vector<8x256xf32>
    %23 = arith.truncf %22 : vector<8x256xf32> to vector<8x256xbf16>
    %c0_19 = arith.constant 0 : index
    %c512_20 = arith.constant 512 : index
    %24 = vector.load %arg2[%c0_19, %c512_20] : memref<8x1024xf32, #tpu.memory_space<vmem>>, vector<8x256xf32>
    %25 = arith.truncf %24 : vector<8x256xf32> to vector<8x256xbf16>
    %c0_21 = arith.constant 0 : index
    %c640_22 = arith.constant 640 : index
    %26 = vector.load %arg2[%c0_21, %c640_22] : memref<8x1024xf32, #tpu.memory_space<vmem>>, vector<8x256xf32>
    %27 = arith.truncf %26 : vector<8x256xf32> to vector<8x256xbf16>
    %c0_23 = arith.constant 0 : index
    %c768_24 = arith.constant 768 : index
    %28 = vector.load %arg2[%c0_23, %c768_24] : memref<8x1024xf32, #tpu.memory_space<vmem>>, vector<8x256xf32>
    %29 = arith.truncf %28 : vector<8x256xf32> to vector<8x256xbf16>
    %30 = tpu.concatenate %3, %5, %7, %9, %11, %13, %15, %17, %19, %21, %23, %25, %27, %29 in 0 : vector<8x256xbf16>, vector<8x256xbf16>, vector<8x256xbf16>, vector<8x256xbf16>, vector<8x256xbf16>, vector<8x256xbf16>, vector<8x256xbf16>, vector<8x256xbf16>, vector<8x256xbf16>, vector<8x256xbf16>, vector<8x256xbf16>, vector<8x256xbf16>, vector<8x256xbf16>, vector<8x256xbf16> -> vector<112x256xbf16>
    %cst = arith.constant dense<0.000000e+00> : vector<112x256xf32>
    %31 = tpu.matmul %30, %0, %cst {dimension_numbers = #tpu.dot_dimension_numbers<[1], [0], [0], [1], [0, 0, 1, 1], [], []>} : vector<112x256xbf16>, vector<256x256xbf16>, vector<112x256xf32> -> vector<112x256xf32>
    %32 = vector.extract_strided_slice %31 {offsets = [0, 0], sizes = [112, 128], strides = [1, 1]} : vector<112x256xf32> to vector<112x128xf32>
    %33 = vector.extract_strided_slice %31 {offsets = [0, 128], sizes = [112, 128], strides = [1, 1]} : vector<112x256xf32> to vector<112x128xf32>
    %34 = vector.extract_strided_slice %32 {offsets = [0, 0], sizes = [8, 128], strides = [1, 1]} : vector<112x128xf32> to vector<8x128xf32>
    %35 = vector.extract_strided_slice %33 {offsets = [0, 0], sizes = [8, 128], strides = [1, 1]} : vector<112x128xf32> to vector<8x128xf32>
    %36 = vector.extract_strided_slice %32 {offsets = [56, 0], sizes = [8, 128], strides = [1, 1]} : vector<112x128xf32> to vector<8x128xf32>
    %37 = vector.extract_strided_slice %33 {offsets = [56, 0], sizes = [8, 128], strides = [1, 1]} : vector<112x128xf32> to vector<8x128xf32>
    %38 = arith.subf %36, %34 : vector<8x128xf32>
    %39 = arith.subf %37, %35 : vector<8x128xf32>
    %40 = arith.mulf %38, %38 : vector<8x128xf32>
    %41 = arith.mulf %39, %39 : vector<8x128xf32>
    %42 = arith.addf %40, %41 : vector<8x128xf32>
    %43 = arith.mulf %36, %36 : vector<8x128xf32>
    %44 = arith.mulf %37, %37 : vector<8x128xf32>
    %45 = arith.addf %43, %44 : vector<8x128xf32>
    %46 = vector.extract_strided_slice %32 {offsets = [8, 0], sizes = [8, 128], strides = [1, 1]} : vector<112x128xf32> to vector<8x128xf32>
    %47 = vector.extract_strided_slice %33 {offsets = [8, 0], sizes = [8, 128], strides = [1, 1]} : vector<112x128xf32> to vector<8x128xf32>
    %48 = vector.extract_strided_slice %32 {offsets = [64, 0], sizes = [8, 128], strides = [1, 1]} : vector<112x128xf32> to vector<8x128xf32>
    %49 = vector.extract_strided_slice %33 {offsets = [64, 0], sizes = [8, 128], strides = [1, 1]} : vector<112x128xf32> to vector<8x128xf32>
    %50 = arith.subf %48, %46 : vector<8x128xf32>
    %51 = arith.subf %49, %47 : vector<8x128xf32>
    %52 = arith.mulf %50, %50 : vector<8x128xf32>
    %53 = arith.mulf %51, %51 : vector<8x128xf32>
    %54 = arith.addf %52, %53 : vector<8x128xf32>
    %55 = arith.mulf %48, %48 : vector<8x128xf32>
    %56 = arith.mulf %49, %49 : vector<8x128xf32>
    %57 = arith.addf %55, %56 : vector<8x128xf32>
    %58 = vector.extract_strided_slice %32 {offsets = [16, 0], sizes = [8, 128], strides = [1, 1]} : vector<112x128xf32> to vector<8x128xf32>
    %59 = vector.extract_strided_slice %33 {offsets = [16, 0], sizes = [8, 128], strides = [1, 1]} : vector<112x128xf32> to vector<8x128xf32>
    %60 = vector.extract_strided_slice %32 {offsets = [72, 0], sizes = [8, 128], strides = [1, 1]} : vector<112x128xf32> to vector<8x128xf32>
    %61 = vector.extract_strided_slice %33 {offsets = [72, 0], sizes = [8, 128], strides = [1, 1]} : vector<112x128xf32> to vector<8x128xf32>
    %62 = arith.subf %60, %58 : vector<8x128xf32>
    %63 = arith.subf %61, %59 : vector<8x128xf32>
    %64 = arith.mulf %62, %62 : vector<8x128xf32>
    %65 = arith.mulf %63, %63 : vector<8x128xf32>
    %66 = arith.addf %64, %65 : vector<8x128xf32>
    %67 = arith.mulf %60, %60 : vector<8x128xf32>
    %68 = arith.mulf %61, %61 : vector<8x128xf32>
    %69 = arith.addf %67, %68 : vector<8x128xf32>
    %70 = vector.extract_strided_slice %32 {offsets = [24, 0], sizes = [8, 128], strides = [1, 1]} : vector<112x128xf32> to vector<8x128xf32>
    %71 = vector.extract_strided_slice %33 {offsets = [24, 0], sizes = [8, 128], strides = [1, 1]} : vector<112x128xf32> to vector<8x128xf32>
    %72 = vector.extract_strided_slice %32 {offsets = [80, 0], sizes = [8, 128], strides = [1, 1]} : vector<112x128xf32> to vector<8x128xf32>
    %73 = vector.extract_strided_slice %33 {offsets = [80, 0], sizes = [8, 128], strides = [1, 1]} : vector<112x128xf32> to vector<8x128xf32>
    %74 = arith.subf %72, %70 : vector<8x128xf32>
    %75 = arith.subf %73, %71 : vector<8x128xf32>
    %76 = arith.mulf %74, %74 : vector<8x128xf32>
    %77 = arith.mulf %75, %75 : vector<8x128xf32>
    %78 = arith.addf %76, %77 : vector<8x128xf32>
    %79 = arith.mulf %72, %72 : vector<8x128xf32>
    %80 = arith.mulf %73, %73 : vector<8x128xf32>
    %81 = arith.addf %79, %80 : vector<8x128xf32>
    %82 = vector.extract_strided_slice %32 {offsets = [32, 0], sizes = [8, 128], strides = [1, 1]} : vector<112x128xf32> to vector<8x128xf32>
    %83 = vector.extract_strided_slice %33 {offsets = [32, 0], sizes = [8, 128], strides = [1, 1]} : vector<112x128xf32> to vector<8x128xf32>
    %84 = vector.extract_strided_slice %32 {offsets = [88, 0], sizes = [8, 128], strides = [1, 1]} : vector<112x128xf32> to vector<8x128xf32>
    %85 = vector.extract_strided_slice %33 {offsets = [88, 0], sizes = [8, 128], strides = [1, 1]} : vector<112x128xf32> to vector<8x128xf32>
    %86 = arith.subf %84, %82 : vector<8x128xf32>
    %87 = arith.subf %85, %83 : vector<8x128xf32>
    %88 = arith.mulf %86, %86 : vector<8x128xf32>
    %89 = arith.mulf %87, %87 : vector<8x128xf32>
    %90 = arith.addf %88, %89 : vector<8x128xf32>
    %91 = arith.mulf %84, %84 : vector<8x128xf32>
    %92 = arith.mulf %85, %85 : vector<8x128xf32>
    %93 = arith.addf %91, %92 : vector<8x128xf32>
    %94 = vector.extract_strided_slice %32 {offsets = [40, 0], sizes = [8, 128], strides = [1, 1]} : vector<112x128xf32> to vector<8x128xf32>
    %95 = vector.extract_strided_slice %33 {offsets = [40, 0], sizes = [8, 128], strides = [1, 1]} : vector<112x128xf32> to vector<8x128xf32>
    %96 = vector.extract_strided_slice %32 {offsets = [96, 0], sizes = [8, 128], strides = [1, 1]} : vector<112x128xf32> to vector<8x128xf32>
    %97 = vector.extract_strided_slice %33 {offsets = [96, 0], sizes = [8, 128], strides = [1, 1]} : vector<112x128xf32> to vector<8x128xf32>
    %98 = arith.subf %96, %94 : vector<8x128xf32>
    %99 = arith.subf %97, %95 : vector<8x128xf32>
    %100 = arith.mulf %98, %98 : vector<8x128xf32>
    %101 = arith.mulf %99, %99 : vector<8x128xf32>
    %102 = arith.addf %100, %101 : vector<8x128xf32>
    %103 = arith.mulf %96, %96 : vector<8x128xf32>
    %104 = arith.mulf %97, %97 : vector<8x128xf32>
    %105 = arith.addf %103, %104 : vector<8x128xf32>
    %106 = vector.extract_strided_slice %32 {offsets = [48, 0], sizes = [8, 128], strides = [1, 1]} : vector<112x128xf32> to vector<8x128xf32>
    %107 = vector.extract_strided_slice %33 {offsets = [48, 0], sizes = [8, 128], strides = [1, 1]} : vector<112x128xf32> to vector<8x128xf32>
    %108 = vector.extract_strided_slice %32 {offsets = [104, 0], sizes = [8, 128], strides = [1, 1]} : vector<112x128xf32> to vector<8x128xf32>
    %109 = vector.extract_strided_slice %33 {offsets = [104, 0], sizes = [8, 128], strides = [1, 1]} : vector<112x128xf32> to vector<8x128xf32>
    %110 = arith.subf %108, %106 : vector<8x128xf32>
    %111 = arith.subf %109, %107 : vector<8x128xf32>
    %112 = arith.mulf %110, %110 : vector<8x128xf32>
    %113 = arith.mulf %111, %111 : vector<8x128xf32>
    %114 = arith.addf %112, %113 : vector<8x128xf32>
    %115 = arith.mulf %108, %108 : vector<8x128xf32>
    %116 = arith.mulf %109, %109 : vector<8x128xf32>
    %117 = arith.addf %115, %116 : vector<8x128xf32>
    %118 = arith.minimumf %42, %54 : vector<8x128xf32>
    %119 = arith.maximumf %42, %54 : vector<8x128xf32>
    %120 = arith.minimumf %119, %66 : vector<8x128xf32>
    %121 = arith.maximumf %119, %66 : vector<8x128xf32>
    %122 = arith.minimumf %121, %78 : vector<8x128xf32>
    %123 = arith.maximumf %121, %78 : vector<8x128xf32>
    %124 = arith.minimumf %123, %90 : vector<8x128xf32>
    %125 = arith.maximumf %123, %90 : vector<8x128xf32>
    %126 = arith.minimumf %125, %102 : vector<8x128xf32>
    %127 = arith.maximumf %125, %102 : vector<8x128xf32>
    %128 = arith.minimumf %127, %114 : vector<8x128xf32>
    %129 = arith.minimumf %118, %120 : vector<8x128xf32>
    %130 = arith.maximumf %118, %120 : vector<8x128xf32>
    %131 = arith.minimumf %130, %122 : vector<8x128xf32>
    %132 = arith.maximumf %130, %122 : vector<8x128xf32>
    %133 = arith.minimumf %132, %124 : vector<8x128xf32>
    %134 = arith.maximumf %132, %124 : vector<8x128xf32>
    %135 = arith.minimumf %134, %126 : vector<8x128xf32>
    %136 = arith.maximumf %134, %126 : vector<8x128xf32>
    %137 = arith.minimumf %136, %128 : vector<8x128xf32>
    %138 = arith.minimumf %129, %131 : vector<8x128xf32>
    %139 = arith.maximumf %129, %131 : vector<8x128xf32>
    %140 = arith.minimumf %139, %133 : vector<8x128xf32>
    %141 = arith.maximumf %139, %133 : vector<8x128xf32>
    %142 = arith.minimumf %141, %135 : vector<8x128xf32>
    %143 = arith.maximumf %141, %135 : vector<8x128xf32>
    %144 = arith.minimumf %143, %137 : vector<8x128xf32>
    %145 = arith.maximumf %138, %140 : vector<8x128xf32>
    %146 = arith.maximumf %145, %142 : vector<8x128xf32>
    %147 = arith.maximumf %146, %144 : vector<8x128xf32>
    %148 = arith.minimumf %45, %57 : vector<8x128xf32>
    %149 = arith.maximumf %45, %57 : vector<8x128xf32>
    %150 = arith.minimumf %149, %69 : vector<8x128xf32>
    %151 = arith.maximumf %149, %69 : vector<8x128xf32>
    %152 = arith.minimumf %151, %81 : vector<8x128xf32>
    %153 = arith.maximumf %151, %81 : vector<8x128xf32>
    %154 = arith.minimumf %153, %93 : vector<8x128xf32>
    %155 = arith.maximumf %153, %93 : vector<8x128xf32>
    %156 = arith.minimumf %155, %105 : vector<8x128xf32>
    %157 = arith.maximumf %155, %105 : vector<8x128xf32>
    %158 = arith.minimumf %157, %117 : vector<8x128xf32>
    %159 = arith.minimumf %148, %150 : vector<8x128xf32>
    %160 = arith.maximumf %148, %150 : vector<8x128xf32>
    %161 = arith.minimumf %160, %152 : vector<8x128xf32>
    %162 = arith.maximumf %160, %152 : vector<8x128xf32>
    %163 = arith.minimumf %162, %154 : vector<8x128xf32>
    %164 = arith.maximumf %162, %154 : vector<8x128xf32>
    %165 = arith.minimumf %164, %156 : vector<8x128xf32>
    %166 = arith.maximumf %164, %156 : vector<8x128xf32>
    %167 = arith.minimumf %166, %158 : vector<8x128xf32>
    %168 = arith.minimumf %159, %161 : vector<8x128xf32>
    %169 = arith.maximumf %159, %161 : vector<8x128xf32>
    %170 = arith.minimumf %169, %163 : vector<8x128xf32>
    %171 = arith.maximumf %169, %163 : vector<8x128xf32>
    %172 = arith.minimumf %171, %165 : vector<8x128xf32>
    %173 = arith.maximumf %171, %165 : vector<8x128xf32>
    %174 = arith.minimumf %173, %167 : vector<8x128xf32>
    %175 = arith.maximumf %168, %170 : vector<8x128xf32>
    %176 = arith.maximumf %175, %172 : vector<8x128xf32>
    %177 = arith.maximumf %176, %174 : vector<8x128xf32>
    %cst_25 = arith.constant 0.000000e+00 : f32
    %178 = vector.broadcast %cst_25 : f32 to vector<1x128xf32>
    %179 = arith.cmpf ogt, %1, %178 : vector<1x128xf32>
    %cst_26 = arith.constant 0.000000e+00 : f32
    %180 = vector.shape_cast %179 : vector<1x128xi1> to vector<1x128xi1>
    %181 = vector.broadcast %180 : vector<1x128xi1> to vector<8x128xi1>
    %182 = vector.broadcast %cst_26 : f32 to vector<8x128xf32>
    %183 = arith.select %181, %147, %182 : vector<8x128xi1>, vector<8x128xf32>
    %cst_27 = arith.constant 0.000000e+00 : f32
    %184 = vector.broadcast %cst_27 : f32 to vector<1x128xf32>
    %185 = arith.cmpf ogt, %1, %184 : vector<1x128xf32>
    %cst_28 = arith.constant 1.000000e+00 : f32
    %186 = vector.shape_cast %185 : vector<1x128xi1> to vector<1x128xi1>
    %187 = vector.broadcast %186 : vector<1x128xi1> to vector<8x128xi1>
    %188 = vector.broadcast %cst_28 : f32 to vector<8x128xf32>
    %189 = arith.select %187, %177, %188 : vector<8x128xi1>, vector<8x128xf32>
    %190 = arith.divf %183, %189 : vector<8x128xf32>
    %cst_29 = arith.constant dense<0.000000e+00> : vector<8xf32>
    %191 = vector.multi_reduction <add>, %190, %cst_29 [1] : vector<8x128xf32> to vector<8xf32>
    %192 = vector.shape_cast %191 : vector<8xf32> to vector<8x1xf32>
    %cst_30 = arith.constant 0.0123456791 : f32
    %193 = vector.broadcast %cst_30 : f32 to vector<8x1xf32>
    %194 = arith.mulf %192, %193 : vector<8x1xf32>
    %c0_31 = arith.constant 0 : index
    %c0_32 = arith.constant 0 : index
    %195 = vector.load %arg5[%c0_31, %c0_32] : memref<8x1xf32, #tpu.memory_space<vmem>>, vector<8x1xf32>
    tpu.vector_store %arg5[%c0_31, %c0_32], %194 {strides = array<i32>} : memref<8x1xf32, #tpu.memory_space<vmem>>, vector<8x1xf32>,
    return
  }
  func.func @transform_0(%arg0: i32) -> (i32, i32) {
    %c0_i32 = arith.constant 0 : i32
    %c0_i32_0 = arith.constant 0 : i32
    return %arg0, %c0_i32 : i32, i32
  }
  func.func @transform_1(%arg0: i32) -> (i32, i32) {
    %c0_i32 = arith.constant 0 : i32
    %c0_i32_0 = arith.constant 0 : i32
    return %arg0, %c0_i32 : i32, i32
  }
  func.func @transform_2(%arg0: i32) -> (i32, i32) {
    %c0_i32 = arith.constant 0 : i32
    %c0_i32_0 = arith.constant 0 : i32
    %c0_i32_1 = arith.constant 0 : i32
    return %c0_i32, %c0_i32_0 : i32, i32
  }
  func.func @transform_3(%arg0: i32) -> (i32, i32) {
    %c0_i32 = arith.constant 0 : i32
    %c0_i32_0 = arith.constant 0 : i32
    %c0_i32_1 = arith.constant 0 : i32
    return %c0_i32, %c0_i32_0 : i32, i32
  }
  func.func @transform_4(%arg0: i32) -> (i32, i32) {
    %c0_i32 = arith.constant 0 : i32
    %c0_i32_0 = arith.constant 0 : i32
    return %arg0, %c0_i32 : i32, i32
  }
}

</mosaic_0001>

<bundles_post_ra>
// kernel: tpu_custom_call.1
= control target key start
LH: loop header
LB: loop body
LE: loop exit
PB: predicated region body
PF: predicated region fallthrough
CT: control target
= control target key end

     0   :  { %9 = vsyncpa [#allocation3], 0  ;;  %s885_s0 = inlined_call_operand.hbm [shape: f32[8,1024], index: 0, kind: input, shape index: {}]   ;;  %s886_s1 = inlined_call_operand.hbm [shape: f32[8,1024], index: 1, kind: input, shape index: {}]   ;;  %s887_s2 = inlined_call_operand.hbm [shape: bf16[256,256], index: 2, kind: input, shape index: {}]   ;;  %s888_s3 = inlined_call_operand.vmem [shape: f32[1,128], index: 3, kind: input, shape index: {}]   ;;  %s889_s4 = inlined_call_operand.vmem [shape: f32[8,1], index: 4, kind: output, shape index: {}]  }
   0x1   :  { %10 = vsyncpa [#allocation5], 0  ;;  %s793_s15 = smov [#allocation4]   ;;  %s794_s17 = smov [#allocation2]  }
   0x2   :  { %s27_s16 = sshll.u32 %s793_s15, 4  ;;  %s17_s18 = sshll.u32 %s794_s17, 4  ;;  %s28_s16 = int_to_ptr.vmem [resolvable:$true] %s27_s16  ;;  %s18_s18 = int_to_ptr.vmem [resolvable:$true] %s17_s18 }
   0x3   :  { %s737_s19 = scalar_lea.vmem %s28_s16, 1024  ;;  %p742_p1 = scmp.lt.s32.totalorder %s28_s16, %s28_s16 }
   0x4   :  { %p738_p0 = scmp.ne.s32.totalorder %s28_s16, %s737_s19  ;;  %p743_p2 = scmp.lt.s32.totalorder %s737_s19, %s737_s19 }
   0x6   :  { %p744_p3 = por %p743_p2, %p742_p1 }
   0x8   :  { %p745_p4 = pnand %p744_p3, %p738_p0 }
   0xa   :  { %748 = shalt.err (!%p745_p4)
}
   0xb   :  { %30 = dma.hbm_to_vmem [thread:$0]  %s886_s1, 1024, %s28_s16, [#allocation5]  }
   0xc   :  { %s757_s22 = scalar_lea.vmem %s18_s18, 1024  ;;  %p762_p6 = scmp.lt.s32.totalorder %s18_s18, %s18_s18 }
   0xd   :  { %p758_p5 = scmp.ne.s32.totalorder %s18_s18, %s757_s22  ;;  %p763_p7 = scmp.lt.s32.totalorder %s757_s22, %s757_s22 }
   0xf   :  { %p764_p8 = por %p763_p7, %p762_p6 }
  0x11   :  { %p765_p9 = pnand %p764_p8, %p758_p5 }
  0x13   :  { %768 = shalt.err (!%p765_p9)
}
  0x14   :  { %20 = dma.hbm_to_vmem [thread:$0]  %s885_s0, 1024, %s18_s18, [#allocation3]  }
  0x15   :  { %s795_s25 = smov [#allocation6]  }
  0x16   :  { %s36_s26 = sshll.u32 %s795_s25, 4  ;;  %s37_s26 = int_to_ptr.vmem [resolvable:$true] %s36_s26 }
  0x17   :  { %s777_s27 = scalar_lea.vmem %s37_s26, 4096  ;;  %p782_p11 = scmp.lt.s32.totalorder %s37_s26, %s37_s26 }
  0x18   :  { %p778_p10 = scmp.ne.s32.totalorder %s37_s26, %s777_s27  ;;  %p783_p12 = scmp.lt.s32.totalorder %s777_s27, %s777_s27 }
  0x1a   :  { %p784_p13 = por %p783_p12, %p782_p11 }
  0x1c   :  { %p785_p0 = pnand %p784_p13, %p778_p10 }
  0x1e   :  { %788 = shalt.err (!%p785_p0)
}
  0x1f   :  { %s796_s1 = smov 128   ;;  %s797_s28 = smov 8  }
  0x20   :  { %42 = dma.hbm_to_vmem [thread:$0]  %s887_s2, 4096, %s37_s26, [#allocation5], %s796_s1, %s796_s1, %s797_s28  }
  0x21   :  { %789 = dma.done.wait [#allocation3], 1024  }
  0x22   :  { %790 = vsyncadd [#allocation3], 4294966272 }
  0x23   :  { %791 = dma.done.wait [#allocation5], 5120  }
  0x24   :  { %792 = vsyncadd [#allocation5], 4294962176  ;;  %v679_v0 = vld [vmem:[#allocation6 + $0x74] ss:$8 sps:$4 sm:$0xff]   ;;  %v681_v1 = vld [vmem:[#allocation6 + $0x70] ss:$8 sps:$4 sm:$0xff]  }
  0x25   :  { %368 = vmatprep.subr.bf16.mxu0 %v679_v0  ;;  %641 = vmatprep.subr.bf16.mxu1 %v679_v0  ;;  %v682_v2 = vld [vmem:[#allocation6 + $0x64] ss:$8 sps:$4 sm:$0xff]   ;;  %v684_v3 = vld [vmem:[#allocation6 + $0x60] ss:$8 sps:$4 sm:$0xff]   ;;  %v685_v4 = vld [vmem:[#allocation6 + $0x54] ss:$8 sps:$4 sm:$0xff]  }
  0x26   :  { %369 = vmatpush1.bf16.msra.mxu0 %v681_v1  ;;  %657 = vmatpush1.bf16.msra.mxu1 %v681_v1  ;;  %v687_v5 = vld [vmem:[#allocation6 + $0x50] ss:$8 sps:$4 sm:$0xff]   ;;  %v688_v6 = vld [vmem:[#allocation6 + $0x44] ss:$8 sps:$4 sm:$0xff]   ;;  %v690_v7 = vld [vmem:[#allocation6 + $0x40] ss:$8 sps:$4 sm:$0xff]  }
  0x27   :  { %370 = vmatprep.subr.bf16.mxu0 %v682_v2  ;;  %642 = vmatprep.subr.bf16.mxu1 %v682_v2  ;;  %v691_v8 = vld [vmem:[#allocation6 + $0x34] ss:$8 sps:$4 sm:$0xff]   ;;  %v693_v9 = vld [vmem:[#allocation6 + $0x30] ss:$8 sps:$4 sm:$0xff]   ;;  %v694_v10 = vld [vmem:[#allocation6 + $0x24] ss:$8 sps:$4 sm:$0xff]  }
  0x28   :  { %v696_v11 = vld [vmem:[#allocation6 + $0x20] ss:$8 sps:$4 sm:$0xff]   ;;  %v697_v12 = vld [vmem:[#allocation6 + $0x14] ss:$8 sps:$4 sm:$0xff]   ;;  %v699_v19 = vld [vmem:[#allocation6 + $0x10] ss:$8 sps:$4 sm:$0xff]  }
  0x29   :  { %v88_v13 = vld [vmem:[#allocation2 + $0x8] sm:$0xff]  ;;  %v91_v14 = vld [vmem:[#allocation2 + $0x10] sm:$0xff]  ;;  %v111_v18 = vld [vmem:[#allocation4 + $0x18] sm:$0xff]  ;;  %vm151_vm0 = vcmask 1043456   ;;  %vm601_vm3 = vcmask 7168  }
  0x2a   :  { %371 = vmatpush1.bf16.msra.mxu0 %v684_v3  ;;  %658 = vmatpush1.bf16.msra.mxu1 %v684_v3  ;;  %v833_v15 = vpack.c.bf16 %v88_v13, %v88_v13  ;;  %v835_v16 = vpack.c.bf16 %v91_v14, %v91_v14  ;;  %v109_v17 = vld [vmem:[#allocation4 + $0x10] sm:$0xff]  ;;  %v839_v21 = vpack.c.bf16 %v111_v18, %v111_v18  ;;  %v700_v22 = vld [vmem:[#allocation6 + $0x4] ss:$8 sps:$4 sm:$0xff]   ;;  %v702_v26 = vld [vmem:[#allocation6] ss:$8 sps:$4 sm:$0xff]  }
  0x2b   :  { %372 = vmatprep.subr.bf16.mxu0 %v685_v4  ;;  %643 = vmatprep.subr.bf16.mxu1 %v685_v4  ;;  %v837_v20 = vpack.c.bf16 %v109_v17, %v109_v17  ;;  %v703_v28 = vld [vmem:[#allocation6 + $0xf4] ss:$8 sps:$4 sm:$0xff]   ;;  %v705_v29 = vld [vmem:[#allocation6 + $0xf0] ss:$8 sps:$4 sm:$0xff]   ;;  %v706_v30 = vld [vmem:[#allocation6 + $0xe4] ss:$8 sps:$4 sm:$0xff]  }
  0x2c   :  { %v126_v23 = vrot.slane %v835_v16, 4  ;;  %v142_v24 = vrot.slane %v839_v21, 4  ;;  %v708_v31 = vld [vmem:[#allocation6 + $0xe0] ss:$8 sps:$4 sm:$0xff]   ;;  %v709_v32 = vld [vmem:[#allocation6 + $0xd4] ss:$8 sps:$4 sm:$0xff]  }
  0x2d   :  { %v711_v33 = vld [vmem:[#allocation6 + $0xd0] ss:$8 sps:$4 sm:$0xff]   ;;  %v712_v34 = vld [vmem:[#allocation6 + $0xc4] ss:$8 sps:$4 sm:$0xff]   ;;  %v714_v35 = vld [vmem:[#allocation6 + $0xc0] ss:$8 sps:$4 sm:$0xff]  }
  0x2e   :  { %373 = vmatpush1.bf16.msra.mxu0 %v687_v5  ;;  %659 = vmatpush1.bf16.msra.mxu1 %v687_v5  ;;  %v158_v25 = vsel %vm151_vm0, %v833_v15, %v126_v23  ;;  %v190_v27 = vsel %vm151_vm0, %v837_v20, %v142_v24  ;;  %v715_v36 = vld [vmem:[#allocation6 + $0xb4] ss:$8 sps:$4 sm:$0xff]   ;;  %v717_v37 = vld [vmem:[#allocation6 + $0xb0] ss:$8 sps:$4 sm:$0xff]   ;;  %v718_v38 = vld [vmem:[#allocation6 + $0xa4] ss:$8 sps:$4 sm:$0xff]  }
  0x2f   :  { %374 = vmatprep.subr.bf16.mxu0 %v688_v6  ;;  %644 = vmatprep.subr.bf16.mxu1 %v688_v6  ;;  %v720_v39 = vld [vmem:[#allocation6 + $0xa0] ss:$8 sps:$4 sm:$0xff]   ;;  %v721_v40 = vld [vmem:[#allocation6 + $0x94] ss:$8 sps:$4 sm:$0xff]   ;;  %v723_v43 = vld [vmem:[#allocation6 + $0x90] ss:$8 sps:$4 sm:$0xff]  }
  0x30   :  { %400 = vmatprep.mubr.bf16.mxu0 %v158_v25  ;;  %440 = vmatprep.mubr.bf16.mxu1 %v190_v27  ;;  %v95_v41 = vld [vmem:[#allocation2 + $0x20] sm:$0xff]  ;;  %v115_v42 = vld [vmem:[#allocation4 + $0x28] sm:$0xff]  ;;  %v93_v49 = vld [vmem:[#allocation2 + $0x18] sm:$0xff]  ;;  %v125_v53 = vrot.slane %v833_v15, 4  ;;  %v141_v55 = vrot.slane %v837_v20, 4 }
  0x31   :  { %v724_v44 = vld [vmem:[#allocation6 + $0x84] ss:$8 sps:$4 sm:$0xff]   ;;  %v96_v47 = vpack.c.bf16 %v95_v41, %v95_v41  ;;  %v116_v48 = vpack.c.bf16 %v115_v42, %v115_v42  ;;  %v726_v51 = vld [vmem:[#allocation6 + $0x80] ss:$8 sps:$4 sm:$0xff]   ;;  %v94_v56 = vpack.c.bf16 %v93_v49, %v93_v49  ;;  %v99_v60 = vld [vmem:[#allocation2 + $0x30] sm:$0xff] }
  0x32   :  { %375 = vmatpush1.bf16.msra.mxu0 %v690_v7  ;;  %660 = vmatpush1.bf16.msra.mxu1 %v690_v7  ;;  %v87_v45 = vld [vmem:[#allocation2] sm:$0xff]  ;;  %v106_v46 = vld [vmem:[#allocation4 + $0x8] sm:$0xff]  ;;  %v120_v61 = vld [vmem:[#allocation4 + $0x38] sm:$0xff]  ;;  %v100_v2 = vpack.c.bf16 %v99_v60, %v99_v60 }
  0x33   :  { %376 = vmatprep.subr.bf16.mxu0 %v691_v8  ;;  %645 = vmatprep.subr.bf16.mxu1 %v691_v8  ;;  %v113_v50 = vld [vmem:[#allocation4 + $0x20] sm:$0xff]  ;;  %v89_v52 = vpack.c.bf16 %v87_v45, %v87_v45  ;;  %v108_v54 = vpack.c.bf16 %v106_v46, %v106_v46  ;;  %v130_v57 = vrot.slane %v96_v47, 4  ;;  %v146_v59 = vrot.slane %v116_v48, 4  ;;  %v97_v4 = vld [vmem:[#allocation2 + $0x28] sm:$0xff]  ;;  %v117_v5 = vld [vmem:[#allocation4 + $0x30] sm:$0xff] }
  0x34   :  { %v114_v58 = vpack.c.bf16 %v113_v50, %v113_v50  ;;  %v122_v3 = vpack.c.bf16 %v120_v61, %v120_v61  ;;  %v129_v6 = vrot.slane %v94_v56, 4  ;;  %v98_v8 = vpack.c.bf16 %v97_v4, %v97_v4  ;;  %v102_v17 = vld [vmem:[#allocation2 + $0x38] sm:$0xff]  ;;  %v105_v23 = vld [vmem:[#allocation4] sm:$0xff] }
  0x35   :  { %v154_v62 = vsel %vm151_vm0, %v89_v52, %v125_v53  ;;  %v186_v63 = vsel %vm151_vm0, %v108_v54, %v141_v55  ;;  %v166_v0 = vsel %vm151_vm0, %v94_v56, %v130_v57  ;;  %v104_v20 = vpack.c.bf16 %v102_v17, %v102_v17 }
  0x36   :  { %377 = vmatpush1.bf16.msra.mxu0 %v693_v9  ;;  %661 = vmatpush1.bf16.msra.mxu1 %v693_v9  ;;  %v198_v1 = vsel %vm151_vm0, %v114_v58, %v146_v59  ;;  %v145_v7 = vrot.slane %v114_v58, 4  ;;  %v134_v9 = vrot.slane %v100_v2, 4  ;;  %v133_v18 = vrot.slane %v98_v8, 4 }
  0x37   :  { %378 = vmatprep.subr.bf16.mxu0 %v694_v10  ;;  %646 = vmatprep.subr.bf16.mxu1 %v694_v10  ;;  %v118_v10 = vpack.c.bf16 %v117_v5, %v117_v5  ;;  %v107_v25 = vpack.c.bf16 %v105_v23, %v105_v23  ;;  %v798_v58 = vmov 0  }
  0x38   :  { %v194_v13 = vsel %vm151_vm0, %v839_v21, %v145_v7  ;;  %v174_v14 = vsel %vm151_vm0, %v98_v8, %v134_v9  ;;  %v170_v24 = vsel %vm151_vm0, %v96_v47, %v133_v18  ;;  %v86_v47 = vld [vmem:[%s888_s3] sm:$0x1] }
  0x39   :  { %vm587_vm1 = vcmp.gt.f32.partialorder %v86_v47, 0.0 }
  0x3a   :  { %379 = vmatpush1.bf16.msra.mxu0 %v696_v11  ;;  %662 = vmatpush1.bf16.msra.mxu1 %v696_v11  ;;  %v150_v11 = vrot.slane %v122_v3, 4  ;;  %v872_v59 = vsel %vm587_vm1, 1, %v798_v58 }
  0x3b   :  { %380 = vmatprep.subr.bf16.mxu0 %v697_v12  ;;  %647 = vmatprep.subr.bf16.mxu1 %v697_v12  ;;  %v162_v12 = vsel %vm151_vm0, %v835_v16, %v129_v6 }
  0x3c   :  { %v206_v15 = vsel %vm151_vm0, %v118_v10, %v150_v11 }
  0x3e   :  { %381 = vmatpush1.bf16.msra.mxu0 %v699_v19  ;;  %663 = vmatpush1.bf16.msra.mxu1 %v699_v19  ;;  %v149_v19 = vrot.slane %v118_v10, 4 }
  0x3f   :  { %382 = vmatprep.subr.bf16.mxu0 %v700_v22  ;;  %648 = vmatprep.subr.bf16.mxu1 %v700_v22  ;;  %v138_v22 = vrot.slane %v108_v54, 4 }
  0x40   :  { %v202_v16 = vsel %vm151_vm0, %v116_v48, %v149_v19 }
  0x41   :  { %v182_v21 = vsel %vm151_vm0, %v104_v20, %v138_v22 }
  0x42   :  { %383 = vmatpush1.bf16.msra.mxu0 %v702_v26  ;;  %664 = vmatpush1.bf16.msra.mxu1 %v702_v26  ;;  %v137_v26 = vrot.slane %v107_v25, 4 }
  0x43   :  { %384 = vmatprep.subr.bf16.mxu0 %v703_v28  ;;  %649 = vmatprep.subr.bf16.mxu1 %v703_v28 }
  0x44   :  { %v178_v27 = vsel %vm151_vm0, %v100_v2, %v137_v26 }
  0x46   :  { %385 = vmatpush2.bf16.msra.mxu0 %v705_v29  ;;  %665 = vmatpush2.bf16.msra.mxu1 %v705_v29 }
  0x47   :  { %386 = vmatprep.subr.bf16.mxu0 %v706_v30  ;;  %650 = vmatprep.subr.bf16.mxu1 %v706_v30 }
  0x4a   :  { %387 = vmatpush2.bf16.msra.mxu0 %v708_v31  ;;  %666 = vmatpush2.bf16.msra.mxu1 %v708_v31 }
  0x4b   :  { %388 = vmatprep.subr.bf16.mxu0 %v709_v32  ;;  %651 = vmatprep.subr.bf16.mxu1 %v709_v32 }
  0x4e   :  { %389 = vmatpush2.bf16.msra.mxu0 %v711_v33  ;;  %667 = vmatpush2.bf16.msra.mxu1 %v711_v33 }
  0x4f   :  { %390 = vmatprep.subr.bf16.mxu0 %v712_v34  ;;  %652 = vmatprep.subr.bf16.mxu1 %v712_v34 }
  0x52   :  { %391 = vmatpush2.bf16.msra.mxu0 %v714_v35  ;;  %668 = vmatpush2.bf16.msra.mxu1 %v714_v35 }
  0x53   :  { %392 = vmatprep.subr.bf16.mxu0 %v715_v36  ;;  %653 = vmatprep.subr.bf16.mxu1 %v715_v36 }
  0x56   :  { %393 = vmatpush2.bf16.msra.mxu0 %v717_v37  ;;  %669 = vmatpush2.bf16.msra.mxu1 %v717_v37 }
  0x57   :  { %394 = vmatprep.subr.bf16.mxu0 %v718_v38  ;;  %654 = vmatprep.subr.bf16.mxu1 %v718_v38 }
  0x5a   :  { %395 = vmatpush2.bf16.msra.mxu0 %v720_v39  ;;  %670 = vmatpush2.bf16.msra.mxu1 %v720_v39 }
  0x5b   :  { %396 = vmatprep.subr.bf16.mxu0 %v721_v40  ;;  %655 = vmatprep.subr.bf16.mxu1 %v721_v40 }
  0x5e   :  { %397 = vmatpush2.bf16.msra.mxu0 %v723_v43  ;;  %671 = vmatpush2.bf16.msra.mxu1 %v723_v43 }
  0x5f   :  { %398 = vmatprep.subr.bf16.mxu0 %v724_v44  ;;  %656 = vmatprep.subr.bf16.mxu1 %v724_v44  ;;  %v589_v44 = vlaneseq }
  0x61   :  { %v866_v49 = vshrl.u32 %v589_v44, 7 }
  0x62   :  { %399 = vmatpush2.bf16.msra.mxu0 %v726_v51  ;;  %672 = vmatpush2.bf16.msra.mxu1 %v726_v51 }
  0x63   :  { %v591_v60 = vsub.s32 0, %v866_v49 }
  0x65   :  { %401 = vmatmul.mubr.bf16.vlgmr.msra.gmra.mxu0 %v154_v62  ;;  %441 = vmatmul.mubr.bf16.vlgmr.msra.gmra.mxu1 %v186_v63 }
  0x66   :  { %410 = vmatprep.mubr.bf16.mxu0 %v166_v0  ;;  %450 = vmatprep.mubr.bf16.mxu1 %v198_v1 }
  0x6d   :  { %411 = vmatmul.mubr.bf16.gmra.mxu0 %v162_v12  ;;  %451 = vmatmul.mubr.bf16.gmra.mxu1 %v194_v13 }
  0x6e   :  { %420 = vmatprep.mubr.bf16.mxu0 %v174_v14  ;;  %460 = vmatprep.mubr.bf16.mxu1 %v206_v15 }
  0x75   :  { %421 = vmatmul.mubr.bf16.gmra.mxu0 %v170_v24  ;;  %461 = vmatmul.mubr.bf16.gmra.mxu1 %v202_v16 }
  0x76   :  { %430 = vmatprep.mubr.bf16.mxu0 %v182_v21 }
  0x7d   :  { %431 = vmatmul.mubr.bf16.gmra.mxu0 %v178_v27 }
 0x125   :  { %v402_v28 = vpop.f32.mrf.mxu0  ;;  %v442_v29 = vpop.f32.mrf.mxu1 }
 0x126   :  { %v484_v50 = vmul.f32 %v442_v29, %v442_v29 }
 0x127   :  { %v404_v30 = vpop.f32.mrf.mxu0  ;;  %v444_v31 = vpop.f32.mrf.mxu1 }
 0x128   :  { %v485_v51 = vmul.f32 %v444_v31, %v444_v31 }
 0x129   :  { %v406_v32 = vpop.f32.mrf.mxu0  ;;  %v446_v33 = vpop.f32.mrf.mxu1 }
 0x12a   :  { %v479_v57 = vsub.f32 %v442_v29, %v406_v32  ;;  %v486_v61 = vadd.f32 %v485_v51, %v484_v50  ;;  %v492_v63 = vmul.f32 %v446_v33, %v446_v33 }
 0x12b   :  { %v408_v34 = vpop.f32.mrf.mxu0  ;;  %v448_v36 = vpop.f32.mrf.mxu1 }
 0x12c   :  { %v480_v54 = vsub.f32 %v444_v31, %v408_v34  ;;  %v493_v4 = vmul.f32 %v448_v36, %v448_v36  ;;  %v481_v17 = vmul.f32 %v479_v57, %v479_v57 }
 0x12d   :  { %v412_v35 = vpop.f32.mrf.mxu0  ;;  %v452_v39 = vpop.f32.mrf.mxu1 }
 0x12e   :  { %v487_v62 = vsub.f32 %v446_v33, %v412_v35  ;;  %v482_v3 = vmul.f32 %v480_v54, %v480_v54  ;;  %v500_v5 = vmul.f32 %v452_v39, %v452_v39  ;;  %v494_v26 = vadd.f32 %v493_v4, %v492_v63 }
 0x12f   :  { %v414_v37 = vpop.f32.mrf.mxu0  ;;  %v454_v41 = vpop.f32.mrf.mxu1 }
 0x130   :  { %v488_v55 = vsub.f32 %v448_v36, %v414_v37  ;;  %v501_v9 = vmul.f32 %v454_v41, %v454_v41  ;;  %v489_v18 = vmul.f32 %v487_v62, %v487_v62  ;;  %v483_v21 = vadd.f32 %v482_v3, %v481_v17 }
 0x131   :  { %v416_v38 = vpop.f32.mrf.mxu0  ;;  %v456_v45 = vpop.f32.mrf.mxu1 }
 0x132   :  { %v490_v7 = vmul.f32 %v488_v55, %v488_v55  ;;  %v495_v8 = vsub.f32 %v452_v39, %v416_v38  ;;  %v508_v10 = vmul.f32 %v456_v45, %v456_v45 }
 0x133   :  { %v418_v40 = vpop.f32.mrf.mxu0  ;;  %v458_v52 = vpop.f32.mrf.mxu1 }
 0x134   :  { %v496_v0 = vsub.f32 %v454_v41, %v418_v40  ;;  %v509_v12 = vmul.f32 %v458_v52, %v458_v52  ;;  %v497_v27 = vmul.f32 %v495_v8, %v495_v8  ;;  %v491_v29 = vadd.f32 %v490_v7, %v489_v18 }
 0x135   :  { %v422_v42 = vpop.f32.mrf.mxu0  ;;  %v462_v1 = vpop.f32.mrf.mxu1 }
 0x136   :  { %v498_v19 = vmul.f32 %v496_v0, %v496_v0  ;;  %v503_v23 = vsub.f32 %v456_v45, %v422_v42  ;;  %v510_v31 = vadd.f32 %v509_v12, %v508_v10  ;;  %v516_v35 = vmul.f32 %v462_v1, %v462_v1 }
 0x137   :  { %v424_v43 = vpop.f32.mrf.mxu0  ;;  %v464_v22 = vpop.f32.mrf.mxu1 }
 0x138   :  { %v504_v20 = vsub.f32 %v458_v52, %v424_v43  ;;  %v499_v34 = vadd.f32 %v498_v19, %v497_v27  ;;  %v517_v36 = vmul.f32 %v464_v22, %v464_v22  ;;  %v505_v38 = vmul.f32 %v503_v23, %v503_v23 }
 0x139   :  { %v426_v46 = vpop.f32.mrf.mxu0  ;;  %v466_v37 = vpop.f32.mrf.mxu1 }
 0x13a   :  { %v511_v42 = vsub.f32 %v462_v1, %v426_v46  ;;  %v518_v55 = vadd.f32 %v517_v36, %v516_v35  ;;  %v524_v57 = vmul.f32 %v466_v37, %v466_v37 }
 0x13b   :  { %v428_v48 = vpop.f32.mrf.mxu0  ;;  %v468_v58 = vpop.f32.mrf.mxu1 }
 0x13c   :  { %v512_v43 = vsub.f32 %v464_v22, %v428_v48  ;;  %v525_v63 = vmul.f32 %v468_v58, %v468_v58  ;;  %v513_v12 = vmul.f32 %v511_v42, %v511_v42 }
 0x13d   :  { %v868_v53 = vpop.f32.mrf.mxu0 }
 0x13e   :  { %v514_v48 = vmul.f32 %v512_v43, %v512_v43 }
 0x13f   :  { %v870_v56 = vpop.f32.mrf.mxu0 }
 0x140   :  { %v520_v1 = vsub.f32 %v468_v58, %v870_v56 }
 0x141   :  { %v436_v2 = vpop.f32.mrf.mxu0 }
 0x142   :  { %v471_v6 = vsub.f32 %v436_v2, %v402_v28  ;;  %v476_v13 = vmul.f32 %v436_v2, %v436_v2  ;;  %v502_v28 = vadd.f32 %v501_v9, %v500_v5 }
 0x143   :  { %v438_v11 = vpop.f32.mrf.mxu0 }
 0x144   :  { %v472_v14 = vsub.f32 %v438_v11, %v404_v30  ;;  %v477_v15 = vmul.f32 %v438_v11, %v438_v11  ;;  %v473_v24 = vmul.f32 %v471_v6, %v471_v6  ;;  %v506_v30 = vmul.f32 %v504_v20, %v504_v20 }
 0x146   :  { %v474_v16 = vmul.f32 %v472_v14, %v472_v14  ;;  %v478_v25 = vadd.f32 %v477_v15, %v476_v13  ;;  %v507_v54 = vadd.f32 %v506_v30, %v505_v38  ;;  %v526_v13 = vadd.f32 %v525_v63, %v524_v57 }
 0x147   :  { %v592_v15 = vrot.slane %v872_v59, %v591_v60 }
 0x148   :  { %v475_v32 = vadd.f32 %v474_v16, %v473_v24  ;;  %v558_v33 = vmax.f32 %v478_v25, %v486_v61  ;;  %v557_v45 = vmin.f32 %v478_v25, %v486_v61  ;;  %v519_v61 = vsub.f32 %v466_v37, %v868_v53 }
 0x149   :  { %v515_v24 = vadd.f32 %v514_v48, %v513_v12  ;;  %v522_v25 = vmul.f32 %v520_v1, %v520_v1  ;;  %vm593_vm2 = vcmp.eq.s32.totalorder %v592_v15, 1 }
 0x14a   :  { %v528_v39 = vmax.f32 %v475_v32, %v483_v21  ;;  %v559_v40 = vmin.f32 %v558_v33, %v494_v26  ;;  %v560_v41 = vmax.f32 %v558_v33, %v494_v26  ;;  %v527_v44 = vmin.f32 %v475_v32, %v483_v21 }
 0x14b   :  { %v521_v16 = vmul.f32 %v519_v61, %v519_v61 }
 0x14c   :  { %v529_v47 = vmin.f32 %v528_v39, %v491_v29  ;;  %v530_v50 = vmax.f32 %v528_v39, %v491_v29  ;;  %v561_v51 = vmin.f32 %v560_v41, %v502_v28  ;;  %v562_v52 = vmax.f32 %v560_v41, %v502_v28 }
 0x14d   :  { %v569_v62 = vmax.f32 %v557_v45, %v559_v40  ;;  %v568_v7 = vmin.f32 %v557_v45, %v559_v40  ;;  %v523_v30 = vadd.f32 %v522_v25, %v521_v16 }
 0x14e   :  { %v531_v0 = vmin.f32 %v530_v50, %v499_v34  ;;  %v532_v2 = vmax.f32 %v530_v50, %v499_v34  ;;  %v539_v3 = vmax.f32 %v527_v44, %v529_v47  ;;  %v563_v4 = vmin.f32 %v562_v52, %v510_v31 }
 0x14f   :  { %v564_v5 = vmax.f32 %v562_v52, %v510_v31  ;;  %v570_v6 = vmin.f32 %v569_v62, %v561_v51  ;;  %v571_v46 = vmax.f32 %v569_v62, %v561_v51  ;;  %v538_v26 = vmin.f32 %v527_v44, %v529_v47 }
 0x150   :  { %v533_v17 = vmin.f32 %v532_v2, %v507_v54  ;;  %v534_v18 = vmax.f32 %v532_v2, %v507_v54  ;;  %v540_v19 = vmin.f32 %v539_v3, %v531_v0  ;;  %v541_v20 = vmax.f32 %v539_v3, %v531_v0 }
 0x151   :  { %v565_v8 = vmin.f32 %v564_v5, %v518_v55  ;;  %v566_v9 = vmax.f32 %v564_v5, %v518_v55  ;;  %v572_v10 = vmin.f32 %v571_v46, %v563_v4  ;;  %v573_v11 = vmax.f32 %v571_v46, %v563_v4 }
 0x152   :  { %v578_v14 = vmax.f32 %v568_v7, %v570_v6  ;;  %v577_v21 = vmin.f32 %v568_v7, %v570_v6  ;;  %v535_v31 = vmin.f32 %v534_v18, %v515_v24  ;;  %v536_v49 = vmax.f32 %v534_v18, %v515_v24 }
 0x153   :  { %v567_v23 = vmin.f32 %v566_v9, %v526_v13  ;;  %v574_v56 = vmin.f32 %v573_v11, %v565_v8  ;;  %v575_v27 = vmax.f32 %v573_v11, %v565_v8  ;;  %v543_v32 = vmax.f32 %v541_v20, %v533_v17 }
 0x154   :  { %v579_v22 = vmin.f32 %v578_v14, %v572_v10  ;;  %v580_v53 = vmax.f32 %v578_v14, %v572_v10  ;;  %v548_v60 = vmax.f32 %v538_v26, %v540_v19  ;;  %v542_v33 = vmin.f32 %v541_v20, %v533_v17 }
 0x155   :  { %v576_v34 = vmin.f32 %v575_v27, %v567_v23  ;;  %v537_v37 = vmin.f32 %v536_v49, %v523_v30  ;;  %v544_v38 = vmin.f32 %v543_v32, %v535_v31  ;;  %v545_v39 = vmax.f32 %v543_v32, %v535_v31 }
 0x156   :  { %v581_v28 = vmin.f32 %v580_v53, %v574_v56  ;;  %v582_v29 = vmax.f32 %v580_v53, %v574_v56  ;;  %v584_v59 = vmax.f32 %v577_v21, %v579_v22  ;;  %v549_v40 = vmin.f32 %v548_v60, %v542_v33 }
 0x157   :  { %v550_v41 = vmax.f32 %v548_v60, %v542_v33  ;;  %v547_v43 = vmin.f32 %v538_v26, %v540_v19  ;;  %v546_v45 = vmin.f32 %v545_v39, %v537_v37 }
 0x158   :  { %v585_v35 = vmax.f32 %v584_v59, %v581_v28  ;;  %v583_v36 = vmin.f32 %v582_v29, %v576_v34 }
 0x159   :  { %v551_v47 = vmin.f32 %v550_v41, %v544_v38  ;;  %v552_v50 = vmax.f32 %v550_v41, %v544_v38  ;;  %v554_v51 = vmax.f32 %v547_v43, %v549_v40 }
 0x15a   :  { %v586_v42 = vmax.f32 %v585_v35, %v583_v36 }
 0x15b   :  { %v553_v52 = vmin.f32 %v552_v50, %v546_v45  ;;  %v555_v54 = vmax.f32 %v554_v51, %v551_v47 }
 0x15c   :  { %v595_v44 = vsel %vm593_vm2, %v586_v42, 1.0 }
 0x15d   :  { %727 = vrcp.f32 %v595_v44  ;;  %v556_v55 = vmax.f32 %v555_v54, %v553_v52 }
 0x15f   :  { %v594_v58 = vsel %vm593_vm2, %v556_v55, 0.0 }
 0x16a   :  { %v728_v57 = vpop.eup %727 }
 0x16b   :  { %v597_v62 = vmul.f32 %v728_v57, %v594_v58 }
 0x16d   :  { %598 = vadd.xlane.f32.xlu0 %v597_v62 }
 0x1f6   :  { %v599_v63 = vpop.xlane.xlu0 %598 }
 0x1f7   :  { %v600_v0 = vmul.f32 0.012345679, %v599_v63 }
 0x1f9   :  { %602 = vst.msk [vmem:[%s889_s4] sm:$0xff] %vm601_vm3, %v600_v0 }
 0x1fa   :  { %607 = vsyncpa [#allocation3], 1 }
 0x1fb   :  { %608 = vsyncpa [#allocation5], 1 }

// kernel: tpu_custom_call.1
= control target key start
LH: loop header
LB: loop body
LE: loop exit
PB: predicated region body
PF: predicated region fallthrough
CT: control target
= control target key end

     0   :  { %9 = vsyncpa [#allocation3], 0  ;;  %s885_s0 = inlined_call_operand.hbm [shape: f32[8,1024], index: 0, kind: input, shape index: {}]   ;;  %s886_s1 = inlined_call_operand.hbm [shape: f32[8,1024], index: 1, kind: input, shape index: {}]   ;;  %s887_s2 = inlined_call_operand.hbm [shape: bf16[256,256], index: 2, kind: input, shape index: {}]   ;;  %s888_s3 = inlined_call_operand.vmem [shape: f32[1,128], index: 3, kind: input, shape index: {}]   ;;  %s889_s4 = inlined_call_operand.vmem [shape: f32[8,1], index: 4, kind: output, shape index: {}]  }
   0x1   :  { %10 = vsyncpa [#allocation5], 0  ;;  %s793_s15 = smov [#allocation4]   ;;  %s794_s17 = smov [#allocation2]  }
   0x2   :  { %s27_s16 = sshll.u32 %s793_s15, 4  ;;  %s17_s18 = sshll.u32 %s794_s17, 4  ;;  %s28_s16 = int_to_ptr.vmem [resolvable:$true] %s27_s16  ;;  %s18_s18 = int_to_ptr.vmem [resolvable:$true] %s17_s18 }
   0x3   :  { %s737_s19 = scalar_lea.vmem %s28_s16, 1024  ;;  %p742_p1 = scmp.lt.s32.totalorder %s28_s16, %s28_s16 }
   0x4   :  { %p738_p0 = scmp.ne.s32.totalorder %s28_s16, %s737_s19  ;;  %p743_p2 = scmp.lt.s32.totalorder %s737_s19, %s737_s19 }
   0x6   :  { %p744_p3 = por %p743_p2, %p742_p1 }
   0x8   :  { %p745_p4 = pnand %p744_p3, %p738_p0 }
   0xa   :  { %748 = shalt.err (!%p745_p4)
}
   0xb   :  { %30 = dma.hbm_to_vmem [thread:$0]  %s886_s1, 1024, %s28_s16, [#allocation5]  }
   0xc   :  { %s757_s22 = scalar_lea.vmem %s18_s18, 1024  ;;  %p762_p6 = scmp.lt.s32.totalorder %s18_s18, %s18_s18 }
   0xd   :  { %p758_p5 = scmp.ne.s32.totalorder %s18_s18, %s757_s22  ;;  %p763_p7 = scmp.lt.s32.totalorder %s757_s22, %s757_s22 }
   0xf   :  { %p764_p8 = por %p763_p7, %p762_p6 }
  0x11   :  { %p765_p9 = pnand %p764_p8, %p758_p5 }
  0x13   :  { %768 = shalt.err (!%p765_p9)
}
  0x14   :  { %20 = dma.hbm_to_vmem [thread:$0]  %s885_s0, 1024, %s18_s18, [#allocation3]  }
  0x15   :  { %s795_s25 = smov [#allocation6]  }
  0x16   :  { %s36_s26 = sshll.u32 %s795_s25, 4  ;;  %s37_s26 = int_to_ptr.vmem [resolvable:$true] %s36_s26 }
  0x17   :  { %s777_s27 = scalar_lea.vmem %s37_s26, 4096  ;;  %p782_p11 = scmp.lt.s32.totalorder %s37_s26, %s37_s26 }
  0x18   :  { %p778_p10 = scmp.ne.s32.totalorder %s37_s26, %s777_s27  ;;  %p783_p12 = scmp.lt.s32.totalorder %s777_s27, %s777_s27 }
  0x1a   :  { %p784_p13 = por %p783_p12, %p782_p11 }
  0x1c   :  { %p785_p0 = pnand %p784_p13, %p778_p10 }
  0x1e   :  { %788 = shalt.err (!%p785_p0)
}
  0x1f   :  { %s796_s1 = smov 128   ;;  %s797_s28 = smov 8  }
  0x20   :  { %42 = dma.hbm_to_vmem [thread:$0]  %s887_s2, 4096, %s37_s26, [#allocation5], %s796_s1, %s796_s1, %s797_s28  }
  0x21   :  { %789 = dma.done.wait [#allocation3], 1024  }
  0x22   :  { %790 = vsyncadd [#allocation3], 4294966272 }
  0x23   :  { %791 = dma.done.wait [#allocation5], 5120  }
  0x24   :  { %792 = vsyncadd [#allocation5], 4294962176  ;;  %v679_v0 = vld [vmem:[#allocation6 + $0x74] ss:$8 sps:$4 sm:$0xff]   ;;  %v681_v1 = vld [vmem:[#allocation6 + $0x70] ss:$8 sps:$4 sm:$0xff]  }
  0x25   :  { %368 = vmatprep.subr.bf16.mxu0 %v679_v0  ;;  %641 = vmatprep.subr.bf16.mxu1 %v679_v0  ;;  %v682_v2 = vld [vmem:[#allocation6 + $0x64] ss:$8 sps:$4 sm:$0xff]   ;;  %v684_v3 = vld [vmem:[#allocation6 + $0x60] ss:$8 sps:$4 sm:$0xff]   ;;  %v685_v4 = vld [vmem:[#allocation6 + $0x54] ss:$8 sps:$4 sm:$0xff]  }
  0x26   :  { %369 = vmatpush1.bf16.msra.mxu0 %v681_v1  ;;  %657 = vmatpush1.bf16.msra.mxu1 %v681_v1  ;;  %v687_v5 = vld [vmem:[#allocation6 + $0x50] ss:$8 sps:$4 sm:$0xff]   ;;  %v688_v6 = vld [vmem:[#allocation6 + $0x44] ss:$8 sps:$4 sm:$0xff]   ;;  %v690_v7 = vld [vmem:[#allocation6 + $0x40] ss:$8 sps:$4 sm:$0xff]  }
  0x27   :  { %370 = vmatprep.subr.bf16.mxu0 %v682_v2  ;;  %642 = vmatprep.subr.bf16.mxu1 %v682_v2  ;;  %v691_v8 = vld [vmem:[#allocation6 + $0x34] ss:$8 sps:$4 sm:$0xff]   ;;  %v693_v9 = vld [vmem:[#allocation6 + $0x30] ss:$8 sps:$4 sm:$0xff]   ;;  %v694_v10 = vld [vmem:[#allocation6 + $0x24] ss:$8 sps:$4 sm:$0xff]  }
  0x28   :  { %v696_v11 = vld [vmem:[#allocation6 + $0x20] ss:$8 sps:$4 sm:$0xff]   ;;  %v697_v12 = vld [vmem:[#allocation6 + $0x14] ss:$8 sps:$4 sm:$0xff]   ;;  %v699_v19 = vld [vmem:[#allocation6 + $0x10] ss:$8 sps:$4 sm:$0xff]  }
  0x29   :  { %v88_v13 = vld [vmem:[#allocation2 + $0x8] sm:$0xff]  ;;  %v91_v14 = vld [vmem:[#allocation2 + $0x10] sm:$0xff]  ;;  %v111_v18 = vld [vmem:[#allocation4 + $0x18] sm:$0xff]  ;;  %vm151_vm0 = vcmask 1043456   ;;  %vm601_vm3 = vcmask 7168  }
  0x2a   :  { %371 = vmatpush1.bf16.msra.mxu0 %v684_v3  ;;  %658 = vmatpush1.bf16.msra.mxu1 %v684_v3  ;;  %v833_v15 = vpack.c.bf16 %v88_v13, %v88_v13  ;;  %v835_v16 = vpack.c.bf16 %v91_v14, %v91_v14  ;;  %v109_v17 = vld [vmem:[#allocation4 + $0x10] sm:$0xff]  ;;  %v839_v21 = vpack.c.bf16 %v111_v18, %v111_v18  ;;  %v700_v22 = vld [vmem:[#allocation6 + $0x4] ss:$8 sps:$4 sm:$0xff]   ;;  %v702_v26 = vld [vmem:[#allocation6] ss:$8 sps:$4 sm:$0xff]  }
  0x2b   :  { %372 = vmatprep.subr.bf16.mxu0 %v685_v4  ;;  %643 = vmatprep.subr.bf16.mxu1 %v685_v4  ;;  %v837_v20 = vpack.c.bf16 %v109_v17, %v109_v17  ;;  %v703_v28 = vld [vmem:[#allocation6 + $0xf4] ss:$8 sps:$4 sm:$0xff]   ;;  %v705_v29 = vld [vmem:[#allocation6 + $0xf0] ss:$8 sps:$4 sm:$0xff]   ;;  %v706_v30 = vld [vmem:[#allocation6 + $0xe4] ss:$8 sps:$4 sm:$0xff]  }
  0x2c   :  { %v126_v23 = vrot.slane %v835_v16, 4  ;;  %v142_v24 = vrot.slane %v839_v21, 4  ;;  %v708_v31 = vld [vmem:[#allocation6 + $0xe0] ss:$8 sps:$4 sm:$0xff]   ;;  %v709_v32 = vld [vmem:[#allocation6 + $0xd4] ss:$8 sps:$4 sm:$0xff]  }
  0x2d   :  { %v711_v33 = vld [vmem:[#allocation6 + $0xd0] ss:$8 sps:$4 sm:$0xff]   ;;  %v712_v34 = vld [vmem:[#allocation6 + $0xc4] ss:$8 sps:$4 sm:$0xff]   ;;  %v714_v35 = vld [vmem:[#allocation6 + $0xc0] ss:$8 sps:$4 sm:$0xff]  }
  0x2e   :  { %373 = vmatpush1.bf16.msra.mxu0 %v687_v5  ;;  %659 = vmatpush1.bf16.msra.mxu1 %v687_v5  ;;  %v158_v25 = vsel %vm151_vm0, %v833_v15, %v126_v23  ;;  %v190_v27 = vsel %vm151_vm0, %v837_v20, %v142_v24  ;;  %v715_v36 = vld [vmem:[#allocation6 + $0xb4] ss:$8 sps:$4 sm:$0xff]   ;;  %v717_v37 = vld [vmem:[#allocation6 + $0xb0] ss:$8 sps:$4 sm:$0xff]   ;;  %v718_v38 = vld [vmem:[#allocation6 + $0xa4] ss:$8 sps:$4 sm:$0xff]  }
  0x2f   :  { %374 = vmatprep.subr.bf16.mxu0 %v688_v6  ;;  %644 = vmatprep.subr.bf16.mxu1 %v688_v6  ;;  %v720_v39 = vld [vmem:[#allocation6 + $0xa0] ss:$8 sps:$4 sm:$0xff]   ;;  %v721_v40 = vld [vmem:[#allocation6 + $0x94] ss:$8 sps:$4 sm:$0xff]   ;;  %v723_v43 = vld [vmem:[#allocation6 + $0x90] ss:$8 sps:$4 sm:$0xff]  }
  0x30   :  { %400 = vmatprep.mubr.bf16.mxu0 %v158_v25  ;;  %440 = vmatprep.mubr.bf16.mxu1 %v190_v27  ;;  %v95_v41 = vld [vmem:[#allocation2 + $0x20] sm:$0xff]  ;;  %v115_v42 = vld [vmem:[#allocation4 + $0x28] sm:$0xff]  ;;  %v93_v49 = vld [vmem:[#allocation2 + $0x18] sm:$0xff]  ;;  %v125_v53 = vrot.slane %v833_v15, 4  ;;  %v141_v55 = vrot.slane %v837_v20, 4 }
  0x31   :  { %v724_v44 = vld [vmem:[#allocation6 + $0x84] ss:$8 sps:$4 sm:$0xff]   ;;  %v96_v47 = vpack.c.bf16 %v95_v41, %v95_v41  ;;  %v116_v48 = vpack.c.bf16 %v115_v42, %v115_v42  ;;  %v726_v51 = vld [vmem:[#allocation6 + $0x80] ss:$8 sps:$4 sm:$0xff]   ;;  %v94_v56 = vpack.c.bf16 %v93_v49, %v93_v49  ;;  %v99_v60 = vld [vmem:[#allocation2 + $0x30] sm:$0xff] }
  0x32   :  { %375 = vmatpush1.bf16.msra.mxu0 %v690_v7  ;;  %660 = vmatpush1.bf16.msra.mxu1 %v690_v7  ;;  %v87_v45 = vld [vmem:[#allocation2] sm:$0xff]  ;;  %v106_v46 = vld [vmem:[#allocation4 + $0x8] sm:$0xff]  ;;  %v120_v61 = vld [vmem:[#allocation4 + $0x38] sm:$0xff]  ;;  %v100_v2 = vpack.c.bf16 %v99_v60, %v99_v60 }
  0x33   :  { %376 = vmatprep.subr.bf16.mxu0 %v691_v8  ;;  %645 = vmatprep.subr.bf16.mxu1 %v691_v8  ;;  %v113_v50 = vld [vmem:[#allocation4 + $0x20] sm:$0xff]  ;;  %v89_v52 = vpack.c.bf16 %v87_v45, %v87_v45  ;;  %v108_v54 = vpack.c.bf16 %v106_v46, %v106_v46  ;;  %v130_v57 = vrot.slane %v96_v47, 4  ;;  %v146_v59 = vrot.slane %v116_v48, 4  ;;  %v97_v4 = vld [vmem:[#allocation2 + $0x28] sm:$0xff]  ;;  %v117_v5 = vld [vmem:[#allocation4 + $0x30] sm:$0xff] }
  0x34   :  { %v114_v58 = vpack.c.bf16 %v113_v50, %v113_v50  ;;  %v122_v3 = vpack.c.bf16 %v120_v61, %v120_v61  ;;  %v129_v6 = vrot.slane %v94_v56, 4  ;;  %v98_v8 = vpack.c.bf16 %v97_v4, %v97_v4  ;;  %v102_v17 = vld [vmem:[#allocation2 + $0x38] sm:$0xff]  ;;  %v105_v23 = vld [vmem:[#allocation4] sm:$0xff] }
  0x35   :  { %v154_v62 = vsel %vm151_vm0, %v89_v52, %v125_v53  ;;  %v186_v63 = vsel %vm151_vm0, %v108_v54, %v141_v55  ;;  %v166_v0 = vsel %vm151_vm0, %v94_v56, %v130_v57  ;;  %v104_v20 = vpack.c.bf16 %v102_v17, %v102_v17 }
  0x36   :  { %377 = vmatpush1.bf16.msra.mxu0 %v693_v9  ;;  %661 = vmatpush1.bf16.msra.mxu1 %v693_v9  ;;  %v198_v1 = vsel %vm151_vm0, %v114_v58, %v146_v59  ;;  %v145_v7 = vrot.slane %v114_v58, 4  ;;  %v134_v9 = vrot.slane %v100_v2, 4  ;;  %v133_v18 = vrot.slane %v98_v8, 4 }
  0x37   :  { %378 = vmatprep.subr.bf16.mxu0 %v694_v10  ;;  %646 = vmatprep.subr.bf16.mxu1 %v694_v10  ;;  %v118_v10 = vpack.c.bf16 %v117_v5, %v117_v5  ;;  %v107_v25 = vpack.c.bf16 %v105_v23, %v105_v23  ;;  %v798_v58 = vmov 0  }
  0x38   :  { %v194_v13 = vsel %vm151_vm0, %v839_v21, %v145_v7  ;;  %v174_v14 = vsel %vm151_vm0, %v98_v8, %v134_v9  ;;  %v170_v24 = vsel %vm151_vm0, %v96_v47, %v133_v18  ;;  %v86_v47 = vld [vmem:[%s888_s3] sm:$0x1] }
  0x39   :  { %vm587_vm1 = vcmp.gt.f32.partialorder %v86_v47, 0.0 }
  0x3a   :  { %379 = vmatpush1.bf16.msra.mxu0 %v696_v11  ;;  %662 = vmatpush1.bf16.msra.mxu1 %v696_v11  ;;  %v150_v11 = vrot.slane %v122_v3, 4  ;;  %v872_v59 = vsel %vm587_vm1, 1, %v798_v58 }
  0x3b   :  { %380 = vmatprep.subr.bf16.mxu0 %v697_v12  ;;  %647 = vmatprep.subr.bf16.mxu1 %v697_v12  ;;  %v162_v12 = vsel %vm151_vm0, %v835_v16, %v129_v6 }
  0x3c   :  { %v206_v15 = vsel %vm151_vm0, %v118_v10, %v150_v11 }
  0x3e   :  { %381 = vmatpush1.bf16.msra.mxu0 %v699_v19  ;;  %663 = vmatpush1.bf16.msra.mxu1 %v699_v19  ;;  %v149_v19 = vrot.slane %v118_v10, 4 }
  0x3f   :  { %382 = vmatprep.subr.bf16.mxu0 %v700_v22  ;;  %648 = vmatprep.subr.bf16.mxu1 %v700_v22  ;;  %v138_v22 = vrot.slane %v108_v54, 4 }
  0x40   :  { %v202_v16 = vsel %vm151_vm0, %v116_v48, %v149_v19 }
  0x41   :  { %v182_v21 = vsel %vm151_vm0, %v104_v20, %v138_v22 }
  0x42   :  { %383 = vmatpush1.bf16.msra.mxu0 %v702_v26  ;;  %664 = vmatpush1.bf16.msra.mxu1 %v702_v26  ;;  %v137_v26 = vrot.slane %v107_v25, 4 }
  0x43   :  { %384 = vmatprep.subr.bf16.mxu0 %v703_v28  ;;  %649 = vmatprep.subr.bf16.mxu1 %v703_v28 }
  0x44   :  { %v178_v27 = vsel %vm151_vm0, %v100_v2, %v137_v26 }
  0x46   :  { %385 = vmatpush2.bf16.msra.mxu0 %v705_v29  ;;  %665 = vmatpush2.bf16.msra.mxu1 %v705_v29 }
  0x47   :  { %386 = vmatprep.subr.bf16.mxu0 %v706_v30  ;;  %650 = vmatprep.subr.bf16.mxu1 %v706_v30 }
  0x4a   :  { %387 = vmatpush2.bf16.msra.mxu0 %v708_v31  ;;  %666 = vmatpush2.bf16.msra.mxu1 %v708_v31 }
  0x4b   :  { %388 = vmatprep.subr.bf16.mxu0 %v709_v32  ;;  %651 = vmatprep.subr.bf16.mxu1 %v709_v32 }
  0x4e   :  { %389 = vmatpush2.bf16.msra.mxu0 %v711_v33  ;;  %667 = vmatpush2.bf16.msra.mxu1 %v711_v33 }
  0x4f   :  { %390 = vmatprep.subr.bf16.mxu0 %v712_v34  ;;  %652 = vmatprep.subr.bf16.mxu1 %v712_v34 }
  0x52   :  { %391 = vmatpush2.bf16.msra.mxu0 %v714_v35  ;;  %668 = vmatpush2.bf16.msra.mxu1 %v714_v35 }
  0x53   :  { %392 = vmatprep.subr.bf16.mxu0 %v715_v36  ;;  %653 = vmatprep.subr.bf16.mxu1 %v715_v36 }
  0x56   :  { %393 = vmatpush2.bf16.msra.mxu0 %v717_v37  ;;  %669 = vmatpush2.bf16.msra.mxu1 %v717_v37 }
  0x57   :  { %394 = vmatprep.subr.bf16.mxu0 %v718_v38  ;;  %654 = vmatprep.subr.bf16.mxu1 %v718_v38 }
  0x5a   :  { %395 = vmatpush2.bf16.msra.mxu0 %v720_v39  ;;  %670 = vmatpush2.bf16.msra.mxu1 %v720_v39 }
  0x5b   :  { %396 = vmatprep.subr.bf16.mxu0 %v721_v40  ;;  %655 = vmatprep.subr.bf16.mxu1 %v721_v40 }
  0x5e   :  { %397 = vmatpush2.bf16.msra.mxu0 %v723_v43  ;;  %671 = vmatpush2.bf16.msra.mxu1 %v723_v43 }
  0x5f   :  { %398 = vmatprep.subr.bf16.mxu0 %v724_v44  ;;  %656 = vmatprep.subr.bf16.mxu1 %v724_v44  ;;  %v589_v44 = vlaneseq }
  0x61   :  { %v866_v49 = vshrl.u32 %v589_v44, 7 }
  0x62   :  { %399 = vmatpush2.bf16.msra.mxu0 %v726_v51  ;;  %672 = vmatpush2.bf16.msra.mxu1 %v726_v51 }
  0x63   :  { %v591_v60 = vsub.s32 0, %v866_v49 }
  0x65   :  { %401 = vmatmul.mubr.bf16.vlgmr.msra.gmra.mxu0 %v154_v62  ;;  %441 = vmatmul.mubr.bf16.vlgmr.msra.gmra.mxu1 %v186_v63 }
  0x66   :  { %410 = vmatprep.mubr.bf16.mxu0 %v166_v0  ;;  %450 = vmatprep.mubr.bf16.mxu1 %v198_v1 }
  0x6d   :  { %411 = vmatmul.mubr.bf16.gmra.mxu0 %v162_v12  ;;  %451 = vmatmul.mubr.bf16.gmra.mxu1 %v194_v13 }
  0x6e   :  { %420 = vmatprep.mubr.bf16.mxu0 %v174_v14  ;;  %460 = vmatprep.mubr.bf16.mxu1 %v206_v15 }
  0x75   :  { %421 = vmatmul.mubr.bf16.gmra.mxu0 %v170_v24  ;;  %461 = vmatmul.mubr.bf16.gmra.mxu1 %v202_v16 }
  0x76   :  { %430 = vmatprep.mubr.bf16.mxu0 %v182_v21 }
  0x7d   :  { %431 = vmatmul.mubr.bf16.gmra.mxu0 %v178_v27 }
 0x125   :  { %v402_v28 = vpop.f32.mrf.mxu0  ;;  %v442_v29 = vpop.f32.mrf.mxu1 }
 0x126   :  { %v484_v50 = vmul.f32 %v442_v29, %v442_v29 }
 0x127   :  { %v404_v30 = vpop.f32.mrf.mxu0  ;;  %v444_v31 = vpop.f32.mrf.mxu1 }
 0x128   :  { %v485_v51 = vmul.f32 %v444_v31, %v444_v31 }
 0x129   :  { %v406_v32 = vpop.f32.mrf.mxu0  ;;  %v446_v33 = vpop.f32.mrf.mxu1 }
 0x12a   :  { %v479_v57 = vsub.f32 %v442_v29, %v406_v32  ;;  %v486_v61 = vadd.f32 %v485_v51, %v484_v50  ;;  %v492_v63 = vmul.f32 %v446_v33, %v446_v33 }
 0x12b   :  { %v408_v34 = vpop.f32.mrf.mxu0  ;;  %v448_v36 = vpop.f32.mrf.mxu1 }
 0x12c   :  { %v480_v54 = vsub.f32 %v444_v31, %v408_v34  ;;  %v493_v4 = vmul.f32 %v448_v36, %v448_v36  ;;  %v481_v17 = vmul.f32 %v479_v57, %v479_v57 }
 0x12d   :  { %v412_v35 = vpop.f32.mrf.mxu0  ;;  %v452_v39 = vpop.f32.mrf.mxu1 }
 0x12e   :  { %v487_v62 = vsub.f32 %v446_v33, %v412_v35  ;;  %v482_v3 = vmul.f32 %v480_v54, %v480_v54  ;;  %v500_v5 = vmul.f32 %v452_v39, %v452_v39  ;;  %v494_v26 = vadd.f32 %v493_v4, %v492_v63 }
 0x12f   :  { %v414_v37 = vpop.f32.mrf.mxu0  ;;  %v454_v41 = vpop.f32.mrf.mxu1 }
 0x130   :  { %v488_v55 = vsub.f32 %v448_v36, %v414_v37  ;;  %v501_v9 = vmul.f32 %v454_v41, %v454_v41  ;;  %v489_v18 = vmul.f32 %v487_v62, %v487_v62  ;;  %v483_v21 = vadd.f32 %v482_v3, %v481_v17 }
 0x131   :  { %v416_v38 = vpop.f32.mrf.mxu0  ;;  %v456_v45 = vpop.f32.mrf.mxu1 }
 0x132   :  { %v490_v7 = vmul.f32 %v488_v55, %v488_v55  ;;  %v495_v8 = vsub.f32 %v452_v39, %v416_v38  ;;  %v508_v10 = vmul.f32 %v456_v45, %v456_v45 }
 0x133   :  { %v418_v40 = vpop.f32.mrf.mxu0  ;;  %v458_v52 = vpop.f32.mrf.mxu1 }
 0x134   :  { %v496_v0 = vsub.f32 %v454_v41, %v418_v40  ;;  %v509_v12 = vmul.f32 %v458_v52, %v458_v52  ;;  %v497_v27 = vmul.f32 %v495_v8, %v495_v8  ;;  %v491_v29 = vadd.f32 %v490_v7, %v489_v18 }
 0x135   :  { %v422_v42 = vpop.f32.mrf.mxu0  ;;  %v462_v1 = vpop.f32.mrf.mxu1 }
 0x136   :  { %v498_v19 = vmul.f32 %v496_v0, %v496_v0  ;;  %v503_v23 = vsub.f32 %v456_v45, %v422_v42  ;;  %v510_v31 = vadd.f32 %v509_v12, %v508_v10  ;;  %v516_v35 = vmul.f32 %v462_v1, %v462_v1 }
 0x137   :  { %v424_v43 = vpop.f32.mrf.mxu0  ;;  %v464_v22 = vpop.f32.mrf.mxu1 }
 0x138   :  { %v504_v20 = vsub.f32 %v458_v52, %v424_v43  ;;  %v499_v34 = vadd.f32 %v498_v19, %v497_v27  ;;  %v517_v36 = vmul.f32 %v464_v22, %v464_v22  ;;  %v505_v38 = vmul.f32 %v503_v23, %v503_v23 }
 0x139   :  { %v426_v46 = vpop.f32.mrf.mxu0  ;;  %v466_v37 = vpop.f32.mrf.mxu1 }
 0x13a   :  { %v511_v42 = vsub.f32 %v462_v1, %v426_v46  ;;  %v518_v55 = vadd.f32 %v517_v36, %v516_v35  ;;  %v524_v57 = vmul.f32 %v466_v37, %v466_v37 }
 0x13b   :  { %v428_v48 = vpop.f32.mrf.mxu0  ;;  %v468_v58 = vpop.f32.mrf.mxu1 }
 0x13c   :  { %v512_v43 = vsub.f32 %v464_v22, %v428_v48  ;;  %v525_v63 = vmul.f32 %v468_v58, %v468_v58  ;;  %v513_v12 = vmul.f32 %v511_v42, %v511_v42 }
 0x13d   :  { %v868_v53 = vpop.f32.mrf.mxu0 }
 0x13e   :  { %v514_v48 = vmul.f32 %v512_v43, %v512_v43 }
 0x13f   :  { %v870_v56 = vpop.f32.mrf.mxu0 }
 0x140   :  { %v520_v1 = vsub.f32 %v468_v58, %v870_v56 }
 0x141   :  { %v436_v2 = vpop.f32.mrf.mxu0 }
 0x142   :  { %v471_v6 = vsub.f32 %v436_v2, %v402_v28  ;;  %v476_v13 = vmul.f32 %v436_v2, %v436_v2  ;;  %v502_v28 = vadd.f32 %v501_v9, %v500_v5 }
 0x143   :  { %v438_v11 = vpop.f32.mrf.mxu0 }
 0x144   :  { %v472_v14 = vsub.f32 %v438_v11, %v404_v30  ;;  %v477_v15 = vmul.f32 %v438_v11, %v438_v11  ;;  %v473_v24 = vmul.f32 %v471_v6, %v471_v6  ;;  %v506_v30 = vmul.f32 %v504_v20, %v504_v20 }
 0x146   :  { %v474_v16 = vmul.f32 %v472_v14, %v472_v14  ;;  %v478_v25 = vadd.f32 %v477_v15, %v476_v13  ;;  %v507_v54 = vadd.f32 %v506_v30, %v505_v38  ;;  %v526_v13 = vadd.f32 %v525_v63, %v524_v57 }
 0x147   :  { %v592_v15 = vrot.slane %v872_v59, %v591_v60 }
 0x148   :  { %v475_v32 = vadd.f32 %v474_v16, %v473_v24  ;;  %v558_v33 = vmax.f32 %v478_v25, %v486_v61  ;;  %v557_v45 = vmin.f32 %v478_v25, %v486_v61  ;;  %v519_v61 = vsub.f32 %v466_v37, %v868_v53 }
 0x149   :  { %v515_v24 = vadd.f32 %v514_v48, %v513_v12  ;;  %v522_v25 = vmul.f32 %v520_v1, %v520_v1  ;;  %vm593_vm2 = vcmp.eq.s32.totalorder %v592_v15, 1 }
 0x14a   :  { %v528_v39 = vmax.f32 %v475_v32, %v483_v21  ;;  %v559_v40 = vmin.f32 %v558_v33, %v494_v26  ;;  %v560_v41 = vmax.f32 %v558_v33, %v494_v26  ;;  %v527_v44 = vmin.f32 %v475_v32, %v483_v21 }
 0x14b   :  { %v521_v16 = vmul.f32 %v519_v61, %v519_v61 }
 0x14c   :  { %v529_v47 = vmin.f32 %v528_v39, %v491_v29  ;;  %v530_v50 = vmax.f32 %v528_v39, %v491_v29  ;;  %v561_v51 = vmin.f32 %v560_v41, %v502_v28  ;;  %v562_v52 = vmax.f32 %v560_v41, %v502_v28 }
 0x14d   :  { %v569_v62 = vmax.f32 %v557_v45, %v559_v40  ;;  %v568_v7 = vmin.f32 %v557_v45, %v559_v40  ;;  %v523_v30 = vadd.f32 %v522_v25, %v521_v16 }
 0x14e   :  { %v531_v0 = vmin.f32 %v530_v50, %v499_v34  ;;  %v532_v2 = vmax.f32 %v530_v50, %v499_v34  ;;  %v539_v3 = vmax.f32 %v527_v44, %v529_v47  ;;  %v563_v4 = vmin.f32 %v562_v52, %v510_v31 }
 0x14f   :  { %v564_v5 = vmax.f32 %v562_v52, %v510_v31  ;;  %v570_v6 = vmin.f32 %v569_v62, %v561_v51  ;;  %v571_v46 = vmax.f32 %v569_v62, %v561_v51  ;;  %v538_v26 = vmin.f32 %v527_v44, %v529_v47 }
 0x150   :  { %v533_v17 = vmin.f32 %v532_v2, %v507_v54  ;;  %v534_v18 = vmax.f32 %v532_v2, %v507_v54  ;;  %v540_v19 = vmin.f32 %v539_v3, %v531_v0  ;;  %v541_v20 = vmax.f32 %v539_v3, %v531_v0 }
 0x151   :  { %v565_v8 = vmin.f32 %v564_v5, %v518_v55  ;;  %v566_v9 = vmax.f32 %v564_v5, %v518_v55  ;;  %v572_v10 = vmin.f32 %v571_v46, %v563_v4  ;;  %v573_v11 = vmax.f32 %v571_v46, %v563_v4 }
 0x152   :  { %v578_v14 = vmax.f32 %v568_v7, %v570_v6  ;;  %v577_v21 = vmin.f32 %v568_v7, %v570_v6  ;;  %v535_v31 = vmin.f32 %v534_v18, %v515_v24  ;;  %v536_v49 = vmax.f32 %v534_v18, %v515_v24 }
 0x153   :  { %v567_v23 = vmin.f32 %v566_v9, %v526_v13  ;;  %v574_v56 = vmin.f32 %v573_v11, %v565_v8  ;;  %v575_v27 = vmax.f32 %v573_v11, %v565_v8  ;;  %v543_v32 = vmax.f32 %v541_v20, %v533_v17 }
 0x154   :  { %v579_v22 = vmin.f32 %v578_v14, %v572_v10  ;;  %v580_v53 = vmax.f32 %v578_v14, %v572_v10  ;;  %v548_v60 = vmax.f32 %v538_v26, %v540_v19  ;;  %v542_v33 = vmin.f32 %v541_v20, %v533_v17 }
 0x155   :  { %v576_v34 = vmin.f32 %v575_v27, %v567_v23  ;;  %v537_v37 = vmin.f32 %v536_v49, %v523_v30  ;;  %v544_v38 = vmin.f32 %v543_v32, %v535_v31  ;;  %v545_v39 = vmax.f32 %v543_v32, %v535_v31 }
 0x156   :  { %v581_v28 = vmin.f32 %v580_v53, %v574_v56  ;;  %v582_v29 = vmax.f32 %v580_v53, %v574_v56  ;;  %v584_v59 = vmax.f32 %v577_v21, %v579_v22  ;;  %v549_v40 = vmin.f32 %v548_v60, %v542_v33 }
 0x157   :  { %v550_v41 = vmax.f32 %v548_v60, %v542_v33  ;;  %v547_v43 = vmin.f32 %v538_v26, %v540_v19  ;;  %v546_v45 = vmin.f32 %v545_v39, %v537_v37 }
 0x158   :  { %v585_v35 = vmax.f32 %v584_v59, %v581_v28  ;;  %v583_v36 = vmin.f32 %v582_v29, %v576_v34 }
 0x159   :  { %v551_v47 = vmin.f32 %v550_v41, %v544_v38  ;;  %v552_v50 = vmax.f32 %v550_v41, %v544_v38  ;;  %v554_v51 = vmax.f32 %v547_v43, %v549_v40 }
 0x15a   :  { %v586_v42 = vmax.f32 %v585_v35, %v583_v36 }
 0x15b   :  { %v553_v52 = vmin.f32 %v552_v50, %v546_v45  ;;  %v555_v54 = vmax.f32 %v554_v51, %v551_v47 }
 0x15c   :  { %v595_v44 = vsel %vm593_vm2, %v586_v42, 1.0 }
 0x15d   :  { %727 = vrcp.f32 %v595_v44  ;;  %v556_v55 = vmax.f32 %v555_v54, %v553_v52 }
 0x15f   :  { %v594_v58 = vsel %vm593_vm2, %v556_v55, 0.0 }
 0x16a   :  { %v728_v57 = vpop.eup %727 }
 0x16b   :  { %v597_v62 = vmul.f32 %v728_v57, %v594_v58 }
 0x16d   :  { %598 = vadd.xlane.f32.xlu0 %v597_v62 }
 0x1f6   :  { %v599_v63 = vpop.xlane.xlu0 %598 }
 0x1f7   :  { %v600_v0 = vmul.f32 0.012345679, %v599_v63 }
 0x1f9   :  { %602 = vst.msk [vmem:[%s889_s4] sm:$0xff] %vm601_vm3, %v600_v0 }
 0x1fa   :  { %607 = vsyncpa [#allocation3], 1 }
 0x1fb   :  { %608 = vsyncpa [#allocation5], 1 }

</bundles_post_ra>
